<compile_context>
chip_gen: v6e
topology: v6e:2x2x1
jax: 0.10.0
libtpu: 0.0.40
codegen_flags: <defaults>
</compile_context>

<pallas_src>
import functools

import jax
import jax.numpy as jnp
from jax import lax
from jax.experimental import pallas as pl
from jax.experimental.pallas import tpu as pltpu

HIDDEN = 50       # real hidden size (nn.LSTM(hidden_size=50))
OUT = 1           # real output size (Linear(50, 1))
HP = 128          # lane-aligned padded hidden size
OP = 128          # lane-dense padded output width


def lstm_kernel(seq_ref,      # VMEM (L, 1, 1)      input sequence
                wih_ref,      # VMEM (1, 1, 4*HP)   fused input weights (padded)
                b_ref,        # VMEM (1, 1, 4*HP)   fused b_ih + b_hh   (padded)
                whh_ref,      # VMEM (HP, 4*HP)     fused recurrent weights (padded, transposed)
                wlin_ref,     # VMEM (HP, OP)       final linear weights (padded, transposed)
                blin_ref,     # VMEM (1, OP)        final linear bias (padded)
                out_ref,      # VMEM (1, OP)
                gx_sc,        # scratch VMEM (L, 1, 4*HP)
                *, seq_len):
    # Hoist the input + bias contribution off the serial recurrence:
    # gx[t] = x_t * W_ih_row + (b_ih + b_hh)   -- fully parallel broadcast.
    gx_sc[...] = seq_ref[...] * wih_ref[...] + b_ref[...]

    h0 = jnp.zeros((1, HP), jnp.float32)
    c0 = jnp.zeros((1, HP), jnp.float32)

    def step(t, carry):
        h, c = carry
        # One fused (1,HP)@(HP,4HP) MXU matmul for all four gates.
        gates = gx_sc[t] + jnp.dot(h, whh_ref[...],
                                   preferred_element_type=jnp.float32)
        i_g = jax.nn.sigmoid(gates[:, 0 * HP:1 * HP])
        f_g = jax.nn.sigmoid(gates[:, 1 * HP:2 * HP])
        g_g = jnp.tanh(gates[:, 2 * HP:3 * HP])
        o_g = jax.nn.sigmoid(gates[:, 3 * HP:4 * HP])
        c_n = f_g * c + i_g * g_g
        h_n = o_g * jnp.tanh(c_n)
        return h_n, c_n

    # Static trip count -> fully unrolled; h/c live in vregs the whole time.
    h, _ = lax.fori_loop(0, seq_len, step, (h0, c0), unroll=True)

    # Final Linear on the last hidden state; lane-dense (1,128) store.
    out_ref[...] = (jnp.dot(h, wlin_ref[...], preferred_element_type=jnp.float32)
                    + blin_ref[...])


def init_params(key, input_size=1, hidden=HIDDEN, out=OUT):
    """Deterministic init mirroring PyTorch's default U(-1/sqrt(H), 1/sqrt(H))."""
    k = 1.0 / jnp.sqrt(jnp.float32(hidden))
    keys = jax.random.split(key, 6)
    w_ih = jax.random.uniform(keys[0], (4 * hidden, input_size), jnp.float32, -k, k)
    w_hh = jax.random.uniform(keys[1], (4 * hidden, hidden), jnp.float32, -k, k)
    b_ih = jax.random.uniform(keys[2], (4 * hidden,), jnp.float32, -k, k)
    b_hh = jax.random.uniform(keys[3], (4 * hidden,), jnp.float32, -k, k)
    w_lin = jax.random.uniform(keys[4], (out, hidden), jnp.float32, -k, k)
    b_lin = jax.random.uniform(keys[5], (out,), jnp.float32, -k, k)
    return w_ih, w_hh, b_ih, b_hh, w_lin, b_lin


def lstm_forward(seq, params):
    """pred[-1] of LSTM(1,50)+Linear(50,1) on a 1-D float sequence (batch=1)."""
    w_ih, w_hh, b_ih, b_hh, w_lin, b_lin = params
    H = HIDDEN
    L = int(seq.shape[0])
    b_sum = (b_ih + b_hh).astype(jnp.float32)

    # Fused, zero-padded weight layouts (PyTorch gate order i, f, g, o).
    wih_f = jnp.zeros((4 * HP,), jnp.float32)
    b_f = jnp.zeros((4 * HP,), jnp.float32)
    whh_f = jnp.zeros((HP, 4 * HP), jnp.float32)
    for g in range(4):
        wih_f = wih_f.at[g * HP:g * HP + H].set(w_ih[g * H:(g + 1) * H, 0])
        b_f = b_f.at[g * HP:g * HP + H].set(b_sum[g * H:(g + 1) * H])
        whh_f = whh_f.at[:H, g * HP:g * HP + H].set(
            jnp.transpose(w_hh[g * H:(g + 1) * H, :]))
    wih_f = wih_f.reshape(1, 1, 4 * HP)
    b_f = b_f.reshape(1, 1, 4 * HP)

    wlin_p = jnp.zeros((HP, OP), jnp.float32).at[:H, :OUT].set(jnp.transpose(w_lin))
    blin_p = jnp.zeros((1, OP), jnp.float32).at[0, :OUT].set(b_lin)

    seq3 = seq.astype(jnp.float32).reshape(L, 1, 1)

    vmem = pl.BlockSpec(memory_space=pltpu.MemorySpace.VMEM)
    out = pl.pallas_call(
        functools.partial(lstm_kernel, seq_len=L),
        out_shape=jax.ShapeDtypeStruct((1, OP), jnp.float32),
        in_specs=[vmem] * 6,
        out_specs=vmem,
        scratch_shapes=[pltpu.VMEM((L, 1, 4 * HP), jnp.float32)],
    )(seq3, wih_f, b_f, whh_f, wlin_p, blin_p)
    # TODO(synk): batch=1 / a single sequence uses one MXU row and one
    # TensorCore by construction; stacking independent sequences as LHS rows
    # is the real utilization lever on v6e/v7x, but the reference module is
    # strictly batch=1.
    return out[0, :OUT]                     # shape (OUT,) == pred[-1]


def lstm_ref(seq, params):
    """Pure-JAX reference (same math as torch.nn.LSTM + Linear, last step)."""
    w_ih, w_hh, b_ih, b_hh, w_lin, b_lin = params
    H = HIDDEN
    hi = jax.lax.Precision.HIGHEST

    def step(carry, x):
        h, c = carry
        gates = (w_ih[:, 0] * x + b_ih + b_hh
                 + jnp.dot(w_hh, h, precision=hi))
        i = jax.nn.sigmoid(gates[0:H])
        f = jax.nn.sigmoid(gates[H:2 * H])
        g = jnp.tanh(gates[2 * H:3 * H])
        o = jax.nn.sigmoid(gates[3 * H:4 * H])
        c = f * c + i * g
        h = o * jnp.tanh(c)
        return (h, c), h

    (h, _), _ = lax.scan(step, (jnp.zeros(H, jnp.float32),
                                jnp.zeros(H, jnp.float32)), seq)
    return jnp.dot(w_lin, h, precision=hi) + b_lin


if __name__ == "__main__":
    key = jax.random.PRNGKey(0)
    kp, ks = jax.random.split(key)
    params = init_params(kp)

    L = 8
    seq = jax.random.normal(ks, (L,), dtype=jnp.float32)

    pred = lstm_forward(seq, params)
    pred = jax.block_until_ready(pred)

    ref = lstm_ref(seq, params)
    assert pred.shape == (OUT,), pred.shape
    assert jnp.allclose(pred, ref, atol=1e-4, rtol=1e-4), (pred, ref)

    print("KERNEL_OK")
</pallas_src>

<mosaic_0001>
module attributes {stable_mosaic.version = 11 : i64} {
  func.func @lstm_kernel(%arg0: memref<8x1x1xf32, #tpu.memory_space<vmem>>, %arg1: memref<1x1x512xf32, #tpu.memory_space<vmem>>, %arg2: memref<1x1x512xf32, #tpu.memory_space<vmem>>, %arg3: memref<128x512xf32, #tpu.memory_space<vmem>>, %arg4: memref<128x128xf32, #tpu.memory_space<vmem>>, %arg5: memref<1x128xf32, #tpu.memory_space<vmem>>, %arg6: memref<1x128xf32, #tpu.memory_space<vmem>>, %arg7: memref<8x1x512xf32, #tpu.memory_space<vmem>>) attributes {dimension_semantics = [], scalar_prefetch = 0 : i64, scratch_operands = 1 : i64, tpu.core_type = #tpu.core_type<tc>} {
    %c0 = arith.constant 0 : index
    %c0_0 = arith.constant 0 : index
    %c0_1 = arith.constant 0 : index
    %0 = vector.load %arg0[%c0, %c0_0, %c0_1] : memref<8x1x1xf32, #tpu.memory_space<vmem>>, vector<8x1x1xf32>
    %c0_2 = arith.constant 0 : index
    %c0_3 = arith.constant 0 : index
    %c0_4 = arith.constant 0 : index
    %1 = vector.load %arg1[%c0_2, %c0_3, %c0_4] : memref<1x1x512xf32, #tpu.memory_space<vmem>>, vector<1x1x512xf32>
    %2 = vector.broadcast %0 : vector<8x1x1xf32> to vector<8x1x512xf32>
    %3 = vector.broadcast %1 : vector<1x1x512xf32> to vector<8x1x512xf32>
    %4 = arith.mulf %2, %3 : vector<8x1x512xf32>
    %c0_5 = arith.constant 0 : index
    %c0_6 = arith.constant 0 : index
    %c0_7 = arith.constant 0 : index
    %5 = vector.load %arg2[%c0_5, %c0_6, %c0_7] : memref<1x1x512xf32, #tpu.memory_space<vmem>>, vector<1x1x512xf32>
    %6 = vector.broadcast %5 : vector<1x1x512xf32> to vector<8x1x512xf32>
    %7 = arith.addf %4, %6 : vector<8x1x512xf32>
    %c0_8 = arith.constant 0 : index
    %c0_9 = arith.constant 0 : index
    %c0_10 = arith.constant 0 : index
    %8 = vector.load %arg7[%c0_8, %c0_9, %c0_10] : memref<8x1x512xf32, #tpu.memory_space<vmem>>, vector<8x1x512xf32>
    tpu.vector_store %arg7[%c0_8, %c0_9, %c0_10], %7 {strides = array<i32>} : memref<8x1x512xf32, #tpu.memory_space<vmem>>, vector<8x1x512xf32>,
    %cst = arith.constant 0.000000e+00 : f32
    %9 = vector.broadcast %cst : f32 to vector<1x128xf32>
    %cst_11 = arith.constant 0.000000e+00 : f32
    %10 = vector.broadcast %cst_11 : f32 to vector<1x128xf32>
    %c0_i32 = arith.constant 0 : i32
    %11 = arith.index_cast %c0_i32 : i32 to index
    %c0_12 = arith.constant 0 : index
    %c0_13 = arith.constant 0 : index
    %12 = vector.load %arg7[%11, %c0_12, %c0_13] : memref<8x1x512xf32, #tpu.memory_space<vmem>>, vector<1x1x512xf32>
    %13 = vector.shape_cast %12 : vector<1x1x512xf32> to vector<1x512xf32>
    %c0_14 = arith.constant 0 : index
    %c0_15 = arith.constant 0 : index
    %14 = vector.load %arg3[%c0_14, %c0_15] : memref<128x512xf32, #tpu.memory_space<vmem>>, vector<128x512xf32>
    %cst_16 = arith.constant dense<0.000000e+00> : vector<1x512xf32>
    %15 = tpu.matmul %9, %14, %cst_16 {dimension_numbers = #tpu.dot_dimension_numbers<[1], [0], [0], [1], [0, 0, 1, 1], [], []>} : vector<1x128xf32>, vector<128x512xf32>, vector<1x512xf32> -> vector<1x512xf32>
    %16 = arith.addf %13, %15 : vector<1x512xf32>
    %17 = vector.extract_strided_slice %16 {offsets = [0, 0], sizes = [1, 128], strides = [1, 1]} : vector<1x512xf32> to vector<1x128xf32>
    %18 = arith.negf %17 : vector<1x128xf32>
    %19 = math.exp %18 : vector<1x128xf32>
    %cst_17 = arith.constant 1.000000e+00 : f32
    %20 = vector.broadcast %cst_17 : f32 to vector<1x128xf32>
    %21 = arith.addf %20, %19 : vector<1x128xf32>
    %22 = arith.divf %20, %21 : vector<1x128xf32>
    %23 = vector.extract_strided_slice %16 {offsets = [0, 128], sizes = [1, 128], strides = [1, 1]} : vector<1x512xf32> to vector<1x128xf32>
    %24 = arith.negf %23 : vector<1x128xf32>
    %25 = math.exp %24 : vector<1x128xf32>
    %cst_18 = arith.constant 1.000000e+00 : f32
    %26 = vector.broadcast %cst_18 : f32 to vector<1x128xf32>
    %27 = arith.addf %26, %25 : vector<1x128xf32>
    %28 = arith.divf %26, %27 : vector<1x128xf32>
    %29 = vector.extract_strided_slice %16 {offsets = [0, 256], sizes = [1, 128], strides = [1, 1]} : vector<1x512xf32> to vector<1x128xf32>
    %30 = math.tanh %29 : vector<1x128xf32>
    %31 = vector.extract_strided_slice %16 {offsets = [0, 384], sizes = [1, 128], strides = [1, 1]} : vector<1x512xf32> to vector<1x128xf32>
    %32 = arith.negf %31 : vector<1x128xf32>
    %33 = math.exp %32 : vector<1x128xf32>
    %cst_19 = arith.constant 1.000000e+00 : f32
    %34 = vector.broadcast %cst_19 : f32 to vector<1x128xf32>
    %35 = arith.addf %34, %33 : vector<1x128xf32>
    %36 = arith.divf %34, %35 : vector<1x128xf32>
    %37 = arith.mulf %28, %10 : vector<1x128xf32>
    %38 = arith.mulf %22, %30 : vector<1x128xf32>
    %39 = arith.addf %37, %38 : vector<1x128xf32>
    %40 = math.tanh %39 : vector<1x128xf32>
    %41 = arith.mulf %36, %40 : vector<1x128xf32>
    %c1_i32 = arith.constant 1 : i32
    %42 = arith.index_cast %c1_i32 : i32 to index
    %c0_20 = arith.constant 0 : index
    %c0_21 = arith.constant 0 : index
    %43 = vector.load %arg7[%42, %c0_20, %c0_21] : memref<8x1x512xf32, #tpu.memory_space<vmem>>, vector<1x1x512xf32>
    %44 = vector.shape_cast %43 : vector<1x1x512xf32> to vector<1x512xf32>
    %c0_22 = arith.constant 0 : index
    %c0_23 = arith.constant 0 : index
    %45 = vector.load %arg3[%c0_22, %c0_23] : memref<128x512xf32, #tpu.memory_space<vmem>>, vector<128x512xf32>
    %cst_24 = arith.constant dense<0.000000e+00> : vector<1x512xf32>
    %46 = tpu.matmul %41, %45, %cst_24 {dimension_numbers = #tpu.dot_dimension_numbers<[1], [0], [0], [1], [0, 0, 1, 1], [], []>} : vector<1x128xf32>, vector<128x512xf32>, vector<1x512xf32> -> vector<1x512xf32>
    %47 = arith.addf %44, %46 : vector<1x512xf32>
    %48 = vector.extract_strided_slice %47 {offsets = [0, 0], sizes = [1, 128], strides = [1, 1]} : vector<1x512xf32> to vector<1x128xf32>
    %49 = arith.negf %48 : vector<1x128xf32>
    %50 = math.exp %49 : vector<1x128xf32>
    %cst_25 = arith.constant 1.000000e+00 : f32
    %51 = vector.broadcast %cst_25 : f32 to vector<1x128xf32>
    %52 = arith.addf %51, %50 : vector<1x128xf32>
    %53 = arith.divf %51, %52 : vector<1x128xf32>
    %54 = vector.extract_strided_slice %47 {offsets = [0, 128], sizes = [1, 128], strides = [1, 1]} : vector<1x512xf32> to vector<1x128xf32>
    %55 = arith.negf %54 : vector<1x128xf32>
    %56 = math.exp %55 : vector<1x128xf32>
    %cst_26 = arith.constant 1.000000e+00 : f32
    %57 = vector.broadcast %cst_26 : f32 to vector<1x128xf32>
    %58 = arith.addf %57, %56 : vector<1x128xf32>
    %59 = arith.divf %57, %58 : vector<1x128xf32>
    %60 = vector.extract_strided_slice %47 {offsets = [0, 256], sizes = [1, 128], strides = [1, 1]} : vector<1x512xf32> to vector<1x128xf32>
    %61 = math.tanh %60 : vector<1x128xf32>
    %62 = vector.extract_strided_slice %47 {offsets = [0, 384], sizes = [1, 128], strides = [1, 1]} : vector<1x512xf32> to vector<1x128xf32>
    %63 = arith.negf %62 : vector<1x128xf32>
    %64 = math.exp %63 : vector<1x128xf32>
    %cst_27 = arith.constant 1.000000e+00 : f32
    %65 = vector.broadcast %cst_27 : f32 to vector<1x128xf32>
    %66 = arith.addf %65, %64 : vector<1x128xf32>
    %67 = arith.divf %65, %66 : vector<1x128xf32>
    %68 = arith.mulf %59, %39 : vector<1x128xf32>
    %69 = arith.mulf %53, %61 : vector<1x128xf32>
    %70 = arith.addf %68, %69 : vector<1x128xf32>
    %71 = math.tanh %70 : vector<1x128xf32>
    %72 = arith.mulf %67, %71 : vector<1x128xf32>
    %c2_i32 = arith.constant 2 : i32
    %73 = arith.index_cast %c2_i32 : i32 to index
    %c0_28 = arith.constant 0 : index
    %c0_29 = arith.constant 0 : index
    %74 = vector.load %arg7[%73, %c0_28, %c0_29] : memref<8x1x512xf32, #tpu.memory_space<vmem>>, vector<1x1x512xf32>
    %75 = vector.shape_cast %74 : vector<1x1x512xf32> to vector<1x512xf32>
    %c0_30 = arith.constant 0 : index
    %c0_31 = arith.constant 0 : index
    %76 = vector.load %arg3[%c0_30, %c0_31] : memref<128x512xf32, #tpu.memory_space<vmem>>, vector<128x512xf32>
    %cst_32 = arith.constant dense<0.000000e+00> : vector<1x512xf32>
    %77 = tpu.matmul %72, %76, %cst_32 {dimension_numbers = #tpu.dot_dimension_numbers<[1], [0], [0], [1], [0, 0, 1, 1], [], []>} : vector<1x128xf32>, vector<128x512xf32>, vector<1x512xf32> -> vector<1x512xf32>
    %78 = arith.addf %75, %77 : vector<1x512xf32>
    %79 = vector.extract_strided_slice %78 {offsets = [0, 0], sizes = [1, 128], strides = [1, 1]} : vector<1x512xf32> to vector<1x128xf32>
    %80 = arith.negf %79 : vector<1x128xf32>
    %81 = math.exp %80 : vector<1x128xf32>
    %cst_33 = arith.constant 1.000000e+00 : f32
    %82 = vector.broadcast %cst_33 : f32 to vector<1x128xf32>
    %83 = arith.addf %82, %81 : vector<1x128xf32>
    %84 = arith.divf %82, %83 : vector<1x128xf32>
    %85 = vector.extract_strided_slice %78 {offsets = [0, 128], sizes = [1, 128], strides = [1, 1]} : vector<1x512xf32> to vector<1x128xf32>
    %86 = arith.negf %85 : vector<1x128xf32>
    %87 = math.exp %86 : vector<1x128xf32>
    %cst_34 = arith.constant 1.000000e+00 : f32
    %88 = vector.broadcast %cst_34 : f32 to vector<1x128xf32>
    %89 = arith.addf %88, %87 : vector<1x128xf32>
    %90 = arith.divf %88, %89 : vector<1x128xf32>
    %91 = vector.extract_strided_slice %78 {offsets = [0, 256], sizes = [1, 128], strides = [1, 1]} : vector<1x512xf32> to vector<1x128xf32>
    %92 = math.tanh %91 : vector<1x128xf32>
    %93 = vector.extract_strided_slice %78 {offsets = [0, 384], sizes = [1, 128], strides = [1, 1]} : vector<1x512xf32> to vector<1x128xf32>
    %94 = arith.negf %93 : vector<1x128xf32>
    %95 = math.exp %94 : vector<1x128xf32>
    %cst_35 = arith.constant 1.000000e+00 : f32
    %96 = vector.broadcast %cst_35 : f32 to vector<1x128xf32>
    %97 = arith.addf %96, %95 : vector<1x128xf32>
    %98 = arith.divf %96, %97 : vector<1x128xf32>
    %99 = arith.mulf %90, %70 : vector<1x128xf32>
    %100 = arith.mulf %84, %92 : vector<1x128xf32>
    %101 = arith.addf %99, %100 : vector<1x128xf32>
    %102 = math.tanh %101 : vector<1x128xf32>
    %103 = arith.mulf %98, %102 : vector<1x128xf32>
    %c3_i32 = arith.constant 3 : i32
    %104 = arith.index_cast %c3_i32 : i32 to index
    %c0_36 = arith.constant 0 : index
    %c0_37 = arith.constant 0 : index
    %105 = vector.load %arg7[%104, %c0_36, %c0_37] : memref<8x1x512xf32, #tpu.memory_space<vmem>>, vector<1x1x512xf32>
    %106 = vector.shape_cast %105 : vector<1x1x512xf32> to vector<1x512xf32>
    %c0_38 = arith.constant 0 : index
    %c0_39 = arith.constant 0 : index
    %107 = vector.load %arg3[%c0_38, %c0_39] : memref<128x512xf32, #tpu.memory_space<vmem>>, vector<128x512xf32>
    %cst_40 = arith.constant dense<0.000000e+00> : vector<1x512xf32>
    %108 = tpu.matmul %103, %107, %cst_40 {dimension_numbers = #tpu.dot_dimension_numbers<[1], [0], [0], [1], [0, 0, 1, 1], [], []>} : vector<1x128xf32>, vector<128x512xf32>, vector<1x512xf32> -> vector<1x512xf32>
    %109 = arith.addf %106, %108 : vector<1x512xf32>
    %110 = vector.extract_strided_slice %109 {offsets = [0, 0], sizes = [1, 128], strides = [1, 1]} : vector<1x512xf32> to vector<1x128xf32>
    %111 = arith.negf %110 : vector<1x128xf32>
    %112 = math.exp %111 : vector<1x128xf32>
    %cst_41 = arith.constant 1.000000e+00 : f32
    %113 = vector.broadcast %cst_41 : f32 to vector<1x128xf32>
    %114 = arith.addf %113, %112 : vector<1x128xf32>
    %115 = arith.divf %113, %114 : vector<1x128xf32>
    %116 = vector.extract_strided_slice %109 {offsets = [0, 128], sizes = [1, 128], strides = [1, 1]} : vector<1x512xf32> to vector<1x128xf32>
    %117 = arith.negf %116 : vector<1x128xf32>
    %118 = math.exp %117 : vector<1x128xf32>
    %cst_42 = arith.constant 1.000000e+00 : f32
    %119 = vector.broadcast %cst_42 : f32 to vector<1x128xf32>
    %120 = arith.addf %119, %118 : vector<1x128xf32>
    %121 = arith.divf %119, %120 : vector<1x128xf32>
    %122 = vector.extract_strided_slice %109 {offsets = [0, 256], sizes = [1, 128], strides = [1, 1]} : vector<1x512xf32> to vector<1x128xf32>
    %123 = math.tanh %122 : vector<1x128xf32>
    %124 = vector.extract_strided_slice %109 {offsets = [0, 384], sizes = [1, 128], strides = [1, 1]} : vector<1x512xf32> to vector<1x128xf32>
    %125 = arith.negf %124 : vector<1x128xf32>
    %126 = math.exp %125 : vector<1x128xf32>
    %cst_43 = arith.constant 1.000000e+00 : f32
    %127 = vector.broadcast %cst_43 : f32 to vector<1x128xf32>
    %128 = arith.addf %127, %126 : vector<1x128xf32>
    %129 = arith.divf %127, %128 : vector<1x128xf32>
    %130 = arith.mulf %121, %101 : vector<1x128xf32>
    %131 = arith.mulf %115, %123 : vector<1x128xf32>
    %132 = arith.addf %130, %131 : vector<1x128xf32>
    %133 = math.tanh %132 : vector<1x128xf32>
    %134 = arith.mulf %129, %133 : vector<1x128xf32>
    %c4_i32 = arith.constant 4 : i32
    %135 = arith.index_cast %c4_i32 : i32 to index
    %c0_44 = arith.constant 0 : index
    %c0_45 = arith.constant 0 : index
    %136 = vector.load %arg7[%135, %c0_44, %c0_45] : memref<8x1x512xf32, #tpu.memory_space<vmem>>, vector<1x1x512xf32>
    %137 = vector.shape_cast %136 : vector<1x1x512xf32> to vector<1x512xf32>
    %c0_46 = arith.constant 0 : index
    %c0_47 = arith.constant 0 : index
    %138 = vector.load %arg3[%c0_46, %c0_47] : memref<128x512xf32, #tpu.memory_space<vmem>>, vector<128x512xf32>
    %cst_48 = arith.constant dense<0.000000e+00> : vector<1x512xf32>
    %139 = tpu.matmul %134, %138, %cst_48 {dimension_numbers = #tpu.dot_dimension_numbers<[1], [0], [0], [1], [0, 0, 1, 1], [], []>} : vector<1x128xf32>, vector<128x512xf32>, vector<1x512xf32> -> vector<1x512xf32>
    %140 = arith.addf %137, %139 : vector<1x512xf32>
    %141 = vector.extract_strided_slice %140 {offsets = [0, 0], sizes = [1, 128], strides = [1, 1]} : vector<1x512xf32> to vector<1x128xf32>
    %142 = arith.negf %141 : vector<1x128xf32>
    %143 = math.exp %142 : vector<1x128xf32>
    %cst_49 = arith.constant 1.000000e+00 : f32
    %144 = vector.broadcast %cst_49 : f32 to vector<1x128xf32>
    %145 = arith.addf %144, %143 : vector<1x128xf32>
    %146 = arith.divf %144, %145 : vector<1x128xf32>
    %147 = vector.extract_strided_slice %140 {offsets = [0, 128], sizes = [1, 128], strides = [1, 1]} : vector<1x512xf32> to vector<1x128xf32>
    %148 = arith.negf %147 : vector<1x128xf32>
    %149 = math.exp %148 : vector<1x128xf32>
    %cst_50 = arith.constant 1.000000e+00 : f32
    %150 = vector.broadcast %cst_50 : f32 to vector<1x128xf32>
    %151 = arith.addf %150, %149 : vector<1x128xf32>
    %152 = arith.divf %150, %151 : vector<1x128xf32>
    %153 = vector.extract_strided_slice %140 {offsets = [0, 256], sizes = [1, 128], strides = [1, 1]} : vector<1x512xf32> to vector<1x128xf32>
    %154 = math.tanh %153 : vector<1x128xf32>
    %155 = vector.extract_strided_slice %140 {offsets = [0, 384], sizes = [1, 128], strides = [1, 1]} : vector<1x512xf32> to vector<1x128xf32>
    %156 = arith.negf %155 : vector<1x128xf32>
    %157 = math.exp %156 : vector<1x128xf32>
    %cst_51 = arith.constant 1.000000e+00 : f32
    %158 = vector.broadcast %cst_51 : f32 to vector<1x128xf32>
    %159 = arith.addf %158, %157 : vector<1x128xf32>
    %160 = arith.divf %158, %159 : vector<1x128xf32>
    %161 = arith.mulf %152, %132 : vector<1x128xf32>
    %162 = arith.mulf %146, %154 : vector<1x128xf32>
    %163 = arith.addf %161, %162 : vector<1x128xf32>
    %164 = math.tanh %163 : vector<1x128xf32>
    %165 = arith.mulf %160, %164 : vector<1x128xf32>
    %c5_i32 = arith.constant 5 : i32
    %166 = arith.index_cast %c5_i32 : i32 to index
    %c0_52 = arith.constant 0 : index
    %c0_53 = arith.constant 0 : index
    %167 = vector.load %arg7[%166, %c0_52, %c0_53] : memref<8x1x512xf32, #tpu.memory_space<vmem>>, vector<1x1x512xf32>
    %168 = vector.shape_cast %167 : vector<1x1x512xf32> to vector<1x512xf32>
    %c0_54 = arith.constant 0 : index
    %c0_55 = arith.constant 0 : index
    %169 = vector.load %arg3[%c0_54, %c0_55] : memref<128x512xf32, #tpu.memory_space<vmem>>, vector<128x512xf32>
    %cst_56 = arith.constant dense<0.000000e+00> : vector<1x512xf32>
    %170 = tpu.matmul %165, %169, %cst_56 {dimension_numbers = #tpu.dot_dimension_numbers<[1], [0], [0], [1], [0, 0, 1, 1], [], []>} : vector<1x128xf32>, vector<128x512xf32>, vector<1x512xf32> -> vector<1x512xf32>
    %171 = arith.addf %168, %170 : vector<1x512xf32>
    %172 = vector.extract_strided_slice %171 {offsets = [0, 0], sizes = [1, 128], strides = [1, 1]} : vector<1x512xf32> to vector<1x128xf32>
    %173 = arith.negf %172 : vector<1x128xf32>
    %174 = math.exp %173 : vector<1x128xf32>
    %cst_57 = arith.constant 1.000000e+00 : f32
    %175 = vector.broadcast %cst_57 : f32 to vector<1x128xf32>
    %176 = arith.addf %175, %174 : vector<1x128xf32>
    %177 = arith.divf %175, %176 : vector<1x128xf32>
    %178 = vector.extract_strided_slice %171 {offsets = [0, 128], sizes = [1, 128], strides = [1, 1]} : vector<1x512xf32> to vector<1x128xf32>
    %179 = arith.negf %178 : vector<1x128xf32>
    %180 = math.exp %179 : vector<1x128xf32>
    %cst_58 = arith.constant 1.000000e+00 : f32
    %181 = vector.broadcast %cst_58 : f32 to vector<1x128xf32>
    %182 = arith.addf %181, %180 : vector<1x128xf32>
    %183 = arith.divf %181, %182 : vector<1x128xf32>
    %184 = vector.extract_strided_slice %171 {offsets = [0, 256], sizes = [1, 128], strides = [1, 1]} : vector<1x512xf32> to vector<1x128xf32>
    %185 = math.tanh %184 : vector<1x128xf32>
    %186 = vector.extract_strided_slice %171 {offsets = [0, 384], sizes = [1, 128], strides = [1, 1]} : vector<1x512xf32> to vector<1x128xf32>
    %187 = arith.negf %186 : vector<1x128xf32>
    %188 = math.exp %187 : vector<1x128xf32>
    %cst_59 = arith.constant 1.000000e+00 : f32
    %189 = vector.broadcast %cst_59 : f32 to vector<1x128xf32>
    %190 = arith.addf %189, %188 : vector<1x128xf32>
    %191 = arith.divf %189, %190 : vector<1x128xf32>
    %192 = arith.mulf %183, %163 : vector<1x128xf32>
    %193 = arith.mulf %177, %185 : vector<1x128xf32>
    %194 = arith.addf %192, %193 : vector<1x128xf32>
    %195 = math.tanh %194 : vector<1x128xf32>
    %196 = arith.mulf %191, %195 : vector<1x128xf32>
    %c6_i32 = arith.constant 6 : i32
    %197 = arith.index_cast %c6_i32 : i32 to index
    %c0_60 = arith.constant 0 : index
    %c0_61 = arith.constant 0 : index
    %198 = vector.load %arg7[%197, %c0_60, %c0_61] : memref<8x1x512xf32, #tpu.memory_space<vmem>>, vector<1x1x512xf32>
    %199 = vector.shape_cast %198 : vector<1x1x512xf32> to vector<1x512xf32>
    %c0_62 = arith.constant 0 : index
    %c0_63 = arith.constant 0 : index
    %200 = vector.load %arg3[%c0_62, %c0_63] : memref<128x512xf32, #tpu.memory_space<vmem>>, vector<128x512xf32>
    %cst_64 = arith.constant dense<0.000000e+00> : vector<1x512xf32>
    %201 = tpu.matmul %196, %200, %cst_64 {dimension_numbers = #tpu.dot_dimension_numbers<[1], [0], [0], [1], [0, 0, 1, 1], [], []>} : vector<1x128xf32>, vector<128x512xf32>, vector<1x512xf32> -> vector<1x512xf32>
    %202 = arith.addf %199, %201 : vector<1x512xf32>
    %203 = vector.extract_strided_slice %202 {offsets = [0, 0], sizes = [1, 128], strides = [1, 1]} : vector<1x512xf32> to vector<1x128xf32>
    %204 = arith.negf %203 : vector<1x128xf32>
    %205 = math.exp %204 : vector<1x128xf32>
    %cst_65 = arith.constant 1.000000e+00 : f32
    %206 = vector.broadcast %cst_65 : f32 to vector<1x128xf32>
    %207 = arith.addf %206, %205 : vector<1x128xf32>
    %208 = arith.divf %206, %207 : vector<1x128xf32>
    %209 = vector.extract_strided_slice %202 {offsets = [0, 128], sizes = [1, 128], strides = [1, 1]} : vector<1x512xf32> to vector<1x128xf32>
    %210 = arith.negf %209 : vector<1x128xf32>
    %211 = math.exp %210 : vector<1x128xf32>
    %cst_66 = arith.constant 1.000000e+00 : f32
    %212 = vector.broadcast %cst_66 : f32 to vector<1x128xf32>
    %213 = arith.addf %212, %211 : vector<1x128xf32>
    %214 = arith.divf %212, %213 : vector<1x128xf32>
    %215 = vector.extract_strided_slice %202 {offsets = [0, 256], sizes = [1, 128], strides = [1, 1]} : vector<1x512xf32> to vector<1x128xf32>
    %216 = math.tanh %215 : vector<1x128xf32>
    %217 = vector.extract_strided_slice %202 {offsets = [0, 384], sizes = [1, 128], strides = [1, 1]} : vector<1x512xf32> to vector<1x128xf32>
    %218 = arith.negf %217 : vector<1x128xf32>
    %219 = math.exp %218 : vector<1x128xf32>
    %cst_67 = arith.constant 1.000000e+00 : f32
    %220 = vector.broadcast %cst_67 : f32 to vector<1x128xf32>
    %221 = arith.addf %220, %219 : vector<1x128xf32>
    %222 = arith.divf %220, %221 : vector<1x128xf32>
    %223 = arith.mulf %214, %194 : vector<1x128xf32>
    %224 = arith.mulf %208, %216 : vector<1x128xf32>
    %225 = arith.addf %223, %224 : vector<1x128xf32>
    %226 = math.tanh %225 : vector<1x128xf32>
    %227 = arith.mulf %222, %226 : vector<1x128xf32>
    %c7_i32 = arith.constant 7 : i32
    %228 = arith.index_cast %c7_i32 : i32 to index
    %c0_68 = arith.constant 0 : index
    %c0_69 = arith.constant 0 : index
    %229 = vector.load %arg7[%228, %c0_68, %c0_69] : memref<8x1x512xf32, #tpu.memory_space<vmem>>, vector<1x1x512xf32>
    %230 = vector.shape_cast %229 : vector<1x1x512xf32> to vector<1x512xf32>
    %c0_70 = arith.constant 0 : index
    %c0_71 = arith.constant 0 : index
    %231 = vector.load %arg3[%c0_70, %c0_71] : memref<128x512xf32, #tpu.memory_space<vmem>>, vector<128x512xf32>
    %cst_72 = arith.constant dense<0.000000e+00> : vector<1x512xf32>
    %232 = tpu.matmul %227, %231, %cst_72 {dimension_numbers = #tpu.dot_dimension_numbers<[1], [0], [0], [1], [0, 0, 1, 1], [], []>} : vector<1x128xf32>, vector<128x512xf32>, vector<1x512xf32> -> vector<1x512xf32>
    %233 = arith.addf %230, %232 : vector<1x512xf32>
    %234 = vector.extract_strided_slice %233 {offsets = [0, 0], sizes = [1, 128], strides = [1, 1]} : vector<1x512xf32> to vector<1x128xf32>
    %235 = arith.negf %234 : vector<1x128xf32>
    %236 = math.exp %235 : vector<1x128xf32>
    %cst_73 = arith.constant 1.000000e+00 : f32
    %237 = vector.broadcast %cst_73 : f32 to vector<1x128xf32>
    %238 = arith.addf %237, %236 : vector<1x128xf32>
    %239 = arith.divf %237, %238 : vector<1x128xf32>
    %240 = vector.extract_strided_slice %233 {offsets = [0, 128], sizes = [1, 128], strides = [1, 1]} : vector<1x512xf32> to vector<1x128xf32>
    %241 = arith.negf %240 : vector<1x128xf32>
    %242 = math.exp %241 : vector<1x128xf32>
    %cst_74 = arith.constant 1.000000e+00 : f32
    %243 = vector.broadcast %cst_74 : f32 to vector<1x128xf32>
    %244 = arith.addf %243, %242 : vector<1x128xf32>
    %245 = arith.divf %243, %244 : vector<1x128xf32>
    %246 = vector.extract_strided_slice %233 {offsets = [0, 256], sizes = [1, 128], strides = [1, 1]} : vector<1x512xf32> to vector<1x128xf32>
    %247 = math.tanh %246 : vector<1x128xf32>
    %248 = vector.extract_strided_slice %233 {offsets = [0, 384], sizes = [1, 128], strides = [1, 1]} : vector<1x512xf32> to vector<1x128xf32>
    %249 = arith.negf %248 : vector<1x128xf32>
    %250 = math.exp %249 : vector<1x128xf32>
    %cst_75 = arith.constant 1.000000e+00 : f32
    %251 = vector.broadcast %cst_75 : f32 to vector<1x128xf32>
    %252 = arith.addf %251, %250 : vector<1x128xf32>
    %253 = arith.divf %251, %252 : vector<1x128xf32>
    %254 = arith.mulf %245, %225 : vector<1x128xf32>
    %255 = arith.mulf %239, %247 : vector<1x128xf32>
    %256 = arith.addf %254, %255 : vector<1x128xf32>
    %257 = math.tanh %256 : vector<1x128xf32>
    %258 = arith.mulf %253, %257 : vector<1x128xf32>
    %c8_i32 = arith.constant 8 : i32
    %c0_76 = arith.constant 0 : index
    %c0_77 = arith.constant 0 : index
    %259 = vector.load %arg4[%c0_76, %c0_77] : memref<128x128xf32, #tpu.memory_space<vmem>>, vector<128x128xf32>
    %cst_78 = arith.constant dense<0.000000e+00> : vector<1x128xf32>
    %260 = tpu.matmul %258, %259, %cst_78 {dimension_numbers = #tpu.dot_dimension_numbers<[1], [0], [0], [1], [0, 0, 1, 1], [], []>} : vector<1x128xf32>, vector<128x128xf32>, vector<1x128xf32> -> vector<1x128xf32>
    %c0_79 = arith.constant 0 : index
    %c0_80 = arith.constant 0 : index
    %261 = vector.load %arg5[%c0_79, %c0_80] : memref<1x128xf32, #tpu.memory_space<vmem>>, vector<1x128xf32>
    %262 = arith.addf %260, %261 : vector<1x128xf32>
    %c0_81 = arith.constant 0 : index
    %c0_82 = arith.constant 0 : index
    %263 = vector.load %arg6[%c0_81, %c0_82] : memref<1x128xf32, #tpu.memory_space<vmem>>, vector<1x128xf32>
    tpu.vector_store %arg6[%c0_81, %c0_82], %262 {strides = array<i32>} : memref<1x128xf32, #tpu.memory_space<vmem>>, vector<1x128xf32>,
    return
  }
}

</mosaic_0001>

<bundles_post_ra>
// kernel: tpu_custom_call.1
= control target key start
LH: loop header
LB: loop body
LE: loop exit
PB: predicated region body
PF: predicated region fallthrough
CT: control target
= control target key end

     0   :  { %11 = vsyncpa [#allocation4], 0  ;;  %s3311_s0 = inlined_call_operand.vmem [shape: f32[8,1,1], index: 0, kind: input, shape index: {}]   ;;  %s3312_s1 = inlined_call_operand.vmem [shape: f32[1,1,512], index: 1, kind: input, shape index: {}]   ;;  %s3313_s2 = inlined_call_operand.vmem [shape: f32[1,1,512], index: 2, kind: input, shape index: {}]   ;;  %s3314_s3 = inlined_call_operand.hbm [shape: f32[128,512], index: 3, kind: input, shape index: {}]   ;;  %s3315_s4 = inlined_call_operand.hbm [shape: f32[128,128], index: 4, kind: input, shape index: {}]   ;;  %s3316_s5 = inlined_call_operand.vmem [shape: f32[1,128], index: 5, kind: input, shape index: {}]   ;;  %s3317_s6 = inlined_call_operand.hbm [shape: f32[1,128], index: 6, kind: output, shape index: {}]  }
   0x1   :  { %12 = vsyncpa [#allocation7], 0 }
   0x2   :  { %13 = vsyncpa [#allocation5], 0  ;;  %s2316_s21 = smov [#allocation3]  }
   0x3   :  { %s25_s22 = sshll.u32 %s2316_s21, 4  ;;  %s26_s22 = int_to_ptr.vmem [resolvable:$true] %s25_s22 }
   0x4   :  { %s2258_s23 = scalar_lea.vmem %s26_s22, 8192  ;;  %p2263_p1 = scmp.lt.s32.totalorder %s26_s22, %s26_s22 }
   0x5   :  { %p2259_p0 = scmp.ne.s32.totalorder %s26_s22, %s2258_s23  ;;  %p2264_p2 = scmp.lt.s32.totalorder %s2258_s23, %s2258_s23 }
   0x7   :  { %p2265_p3 = por %p2264_p2, %p2263_p1 }
   0x9   :  { %p2266_p4 = pnand %p2265_p3, %p2259_p0 }
   0xb   :  { %2269 = shalt.err (!%p2266_p4)
}
   0xc   :  { %s2317_s24 = smov 512   ;;  %s2318_s25 = smov 32  }
   0xd   :  { %31 = dma.hbm_to_vmem [thread:$0]  %s3314_s3, 8192, %s26_s22, [#allocation4], %s2317_s24, %s2317_s24, %s2318_s25  }
   0xe   :  { %s2319_s28 = smov [#allocation6]  }
   0xf   :  { %s37_s29 = sshll.u32 %s2319_s28, 4  ;;  %s38_s29 = int_to_ptr.vmem [resolvable:$true] %s37_s29 }
  0x10   :  { %s2278_s30 = scalar_lea.vmem %s38_s29, 2048  ;;  %p2283_p6 = scmp.lt.s32.totalorder %s38_s29, %s38_s29 }
  0x11   :  { %p2279_p5 = scmp.ne.s32.totalorder %s38_s29, %s2278_s30  ;;  %p2284_p7 = scmp.lt.s32.totalorder %s2278_s30, %s2278_s30 }
  0x13   :  { %p2285_p8 = por %p2284_p7, %p2283_p6 }
  0x15   :  { %p2286_p9 = pnand %p2285_p8, %p2279_p5 }
  0x17   :  { %2289 = shalt.err (!%p2286_p9)
}
  0x18   :  { %s2320_s7 = smov 128   ;;  %s2321_s8 = smov 8  }
  0x19   :  { %43 = dma.hbm_to_vmem [thread:$0]  %s3315_s4, 2048, %s38_s29, [#allocation7], %s2320_s7, %s2320_s7, %s2321_s8  }
  0x1a   :  { %2310 = dma.done.wait [#allocation4], 8192  }
  0x1b   :  { %2311 = vsyncadd [#allocation4], 4294959104 }
  0x1c   :  { %2312 = dma.done.wait [#allocation7], 2048  }
  0x1d   :  { %2313 = vsyncadd [#allocation7], 4294965248  ;;  %v3318_v0 = vmov 0.0   ;;  %v2323_v1 = vmov 0   ;;  %v2370_v2 = vld [vmem:[#allocation3 + $0x1e8] sm:$0xff]  ;;  %v2372_v3 = vld [vmem:[#allocation3 + $0x1f8] sm:$0xff] }
  0x1e   :  { %291 = vmatprep.mubr.f32.mxu0 %v3318_v0  ;;  %362 = vmatprep.mubr.f32.mxu1 %v3318_v0  ;;  %3415 = vst [vmem:[#allocation12_spill] sm:$0xff] %v2370_v2  ;;  %3416 = vst [vmem:[#allocation13_spill] sm:$0xff] %v2372_v3  ;;  %v2374_v4 = vld [vmem:[#allocation3 + $0x1e0] sm:$0xff]  ;;  %v2378_v5 = vld [vmem:[#allocation3 + $0x1f0] sm:$0xff]  ;;  %vm2325_vm1 = vmmov 0   ;;  %s2326_s28 = smov [#allocation8]  }
  0x1f   :  { %2056 = vset.pattern.permute.xlu0 %v2323_v1  ;;  %2057 = vset.pattern.permute.xlu1 %v2323_v1  ;;  %v2380_v6 = vld [vmem:[#allocation3 + $0x1c8] sm:$0xff]  ;;  %v2382_v7 = vld [vmem:[#allocation3 + $0x1d8] sm:$0xff]  ;;  %v2386_v8 = vld [vmem:[#allocation3 + $0x1c0] sm:$0xff]  ;;  %s1959_s29 = sshll.u32 %s2326_s28, 4  ;;  %s1960_s29 = int_to_ptr.vmem [resolvable:$true] %s1959_s29 }
  0x20   :  { %227 = vmatprep.subr.mxu0 %v2370_v2  ;;  %298 = vmatprep.subr.mxu1 %v2372_v3  ;;  %v2388_v9 = vld [vmem:[#allocation3 + $0x1d0] sm:$0xff]  ;;  %v2390_v10 = vld [vmem:[#allocation3 + $0x1a8] sm:$0xff]  ;;  %v2394_v11 = vld [vmem:[#allocation3 + $0x1b8] sm:$0xff]  ;;  %s2290_s30 = scalar_lea.vmem %s1960_s29, 16  ;;  %s2294_s7 = scalar_lea.vmem %s1960_s29, 32 }
  0x21   :  { %228 = vmatpush1.msra.mxu0 %v2374_v4  ;;  %299 = vmatpush1.msra.mxu1 %v2378_v5  ;;  %v2396_v12 = vld [vmem:[#allocation3 + $0x1a0] sm:$0xff]  ;;  %v2398_v13 = vld [vmem:[#allocation3 + $0x1b0] sm:$0xff]  ;;  %v2402_v14 = vld [vmem:[#allocation3 + $0x188] sm:$0xff]  ;;  %p2291_p10 = scmp.ne.s32.totalorder %s1960_s29, %s2290_s30  ;;  %p2295_p11 = scmp.lt.s32.totalorder %s1960_s29, %s1960_s29 }
  0x22   :  { %229 = vmatprep.subr.mxu0 %v2380_v6  ;;  %300 = vmatprep.subr.mxu1 %v2382_v7  ;;  %v2404_v15 = vld [vmem:[#allocation3 + $0x198] sm:$0xff]  ;;  %v2408_v16 = vld [vmem:[#allocation3 + $0x180] sm:$0xff]  ;;  %v2410_v17 = vld [vmem:[#allocation3 + $0x190] sm:$0xff]  ;;  %p2296_p12 = scmp.lt.s32.totalorder %s2294_s7, %s2290_s30 }
  0x23   :  { %230 = vmatpush1.msra.mxu0 %v2386_v8  ;;  %301 = vmatpush1.msra.mxu1 %v2388_v9  ;;  %v2414_v18 = vld [vmem:[#allocation3 + $0x168] sm:$0xff]  ;;  %v2416_v19 = vld [vmem:[#allocation3 + $0x178] sm:$0xff]  ;;  %v2420_v20 = vld [vmem:[#allocation3 + $0x160] sm:$0xff] }
  0x24   :  { %231 = vmatprep.subr.mxu0 %v2390_v10  ;;  %302 = vmatprep.subr.mxu1 %v2394_v11  ;;  %v2422_v21 = vld [vmem:[#allocation3 + $0x170] sm:$0xff]  ;;  %v2426_v22 = vld [vmem:[#allocation3 + $0x148] sm:$0xff]  ;;  %v2428_v23 = vld [vmem:[#allocation3 + $0x158] sm:$0xff]  ;;  %p2297_p13 = por %p2296_p12, %p2295_p11 }
  0x25   :  { %232 = vmatpush1.msra.mxu0 %v2396_v12  ;;  %303 = vmatpush1.msra.mxu1 %v2398_v13  ;;  %v2432_v24 = vld [vmem:[#allocation3 + $0x140] sm:$0xff]  ;;  %v2434_v25 = vld [vmem:[#allocation3 + $0x150] sm:$0xff]  ;;  %v2438_v26 = vld [vmem:[#allocation3 + $0x128] sm:$0xff] }
  0x26   :  { %233 = vmatprep.subr.mxu0 %v2402_v14  ;;  %304 = vmatprep.subr.mxu1 %v2404_v15  ;;  %v2440_v27 = vld [vmem:[#allocation3 + $0x138] sm:$0xff]  ;;  %v2444_v28 = vld [vmem:[#allocation3 + $0x120] sm:$0xff]  ;;  %v2446_v29 = vld [vmem:[#allocation3 + $0x130] sm:$0xff]  ;;  %p2298_p0 = pnand %p2297_p13, %p2291_p10 }
  0x27   :  { %234 = vmatpush1.msra.mxu0 %v2408_v16  ;;  %305 = vmatpush1.msra.mxu1 %v2410_v17  ;;  %v2450_v30 = vld [vmem:[#allocation3 + $0x108] sm:$0xff]  ;;  %v2452_v31 = vld [vmem:[#allocation3 + $0x118] sm:$0xff]  ;;  %v2456_v32 = vld [vmem:[#allocation3 + $0x100] sm:$0xff] }
  0x28   :  { %235 = vmatprep.subr.mxu0 %v2414_v18  ;;  %306 = vmatprep.subr.mxu1 %v2416_v19  ;;  %v2458_v33 = vld [vmem:[#allocation3 + $0x110] sm:$0xff]  ;;  %v2462_v34 = vld [vmem:[#allocation3 + $0xe8] sm:$0xff]  ;;  %v2464_v35 = vld [vmem:[#allocation3 + $0xf8] sm:$0xff] }
  0x29   :  { %236 = vmatpush1.msra.mxu0 %v2420_v20  ;;  %307 = vmatpush1.msra.mxu1 %v2422_v21  ;;  %v2468_v36 = vld [vmem:[#allocation3 + $0xe0] sm:$0xff]  ;;  %v2470_v37 = vld [vmem:[#allocation3 + $0xf0] sm:$0xff]  ;;  %v2474_v38 = vld [vmem:[#allocation3 + $0xc8] sm:$0xff] }
  0x2a   :  { %237 = vmatprep.subr.mxu0 %v2426_v22  ;;  %308 = vmatprep.subr.mxu1 %v2428_v23  ;;  %v2476_v39 = vld [vmem:[#allocation3 + $0xd8] sm:$0xff]  ;;  %v2480_v40 = vld [vmem:[#allocation3 + $0xc0] sm:$0xff]  ;;  %v2482_v41 = vld [vmem:[#allocation3 + $0xd0] sm:$0xff] }
  0x2b   :  { %238 = vmatpush1.msra.mxu0 %v2432_v24  ;;  %309 = vmatpush1.msra.mxu1 %v2434_v25  ;;  %v2486_v42 = vld [vmem:[#allocation3 + $0xa8] sm:$0xff]  ;;  %v2488_v43 = vld [vmem:[#allocation3 + $0xb8] sm:$0xff]  ;;  %v2492_v44 = vld [vmem:[#allocation3 + $0xa0] sm:$0xff] }
  0x2c   :  { %239 = vmatprep.subr.mxu0 %v2438_v26  ;;  %310 = vmatprep.subr.mxu1 %v2440_v27  ;;  %v2494_v45 = vld [vmem:[#allocation3 + $0xb0] sm:$0xff]  ;;  %v2498_v46 = vld [vmem:[#allocation3 + $0x88] sm:$0xff]  ;;  %v2500_v47 = vld [vmem:[#allocation3 + $0x98] sm:$0xff] }
  0x2d   :  { %240 = vmatpush1.msra.mxu0 %v2444_v28  ;;  %311 = vmatpush1.msra.mxu1 %v2446_v29  ;;  %3417 = vst [vmem:[#allocation14_spill] sm:$0xff] %v2500_v47  ;;  %v2504_v48 = vld [vmem:[#allocation3 + $0x80] sm:$0xff]  ;;  %v2506_v49 = vld [vmem:[#allocation3 + $0x90] sm:$0xff]  ;;  %v2510_v50 = vld [vmem:[#allocation3 + $0x68] sm:$0xff] }
  0x2e   :  { %241 = vmatprep.subr.mxu0 %v2450_v30  ;;  %312 = vmatprep.subr.mxu1 %v2452_v31  ;;  %3418 = vst [vmem:[#allocation15_spill] sm:$0xff] %v2504_v48  ;;  %3419 = vst [vmem:[#allocation16_spill] sm:$0xff] %v2506_v49  ;;  %v2512_v51 = vld [vmem:[#allocation3 + $0x78] sm:$0xff]  ;;  %v2516_v52 = vld [vmem:[#allocation3 + $0x60] sm:$0xff] }
  0x2f   :  { %242 = vmatpush1.msra.mxu0 %v2456_v32  ;;  %313 = vmatpush1.msra.mxu1 %v2458_v33  ;;  %3420 = vst [vmem:[#allocation17_spill] sm:$0xff] %v2510_v50  ;;  %3421 = vst [vmem:[#allocation18_spill] sm:$0xff] %v2512_v51  ;;  %v2518_v53 = vld [vmem:[#allocation3 + $0x70] sm:$0xff]  ;;  %v2522_v54 = vld [vmem:[#allocation3 + $0x48] sm:$0xff] }
  0x30   :  { %243 = vmatprep.subr.mxu0 %v2462_v34  ;;  %314 = vmatprep.subr.mxu1 %v2464_v35  ;;  %3422 = vst [vmem:[#allocation19_spill] sm:$0xff] %v2516_v52  ;;  %3423 = vst [vmem:[#allocation20_spill] sm:$0xff] %v2518_v53  ;;  %v2524_v55 = vld [vmem:[#allocation3 + $0x58] sm:$0xff]  ;;  %v2528_v56 = vld [vmem:[#allocation3 + $0x40] sm:$0xff] }
  0x31   :  { %244 = vmatpush1.msra.mxu0 %v2468_v36  ;;  %315 = vmatpush1.msra.mxu1 %v2470_v37  ;;  %3424 = vst [vmem:[#allocation21_spill] sm:$0xff] %v2522_v54  ;;  %3425 = vst [vmem:[#allocation22_spill] sm:$0xff] %v2524_v55  ;;  %v2530_v57 = vld [vmem:[#allocation3 + $0x50] sm:$0xff]  ;;  %v2534_v58 = vld [vmem:[#allocation3 + $0x28] sm:$0xff] }
  0x32   :  { %245 = vmatprep.subr.mxu0 %v2474_v38  ;;  %316 = vmatprep.subr.mxu1 %v2476_v39  ;;  %3426 = vst [vmem:[#allocation23_spill] sm:$0xff] %v2528_v56  ;;  %3427 = vst [vmem:[#allocation24_spill] sm:$0xff] %v2530_v57  ;;  %v2536_v59 = vld [vmem:[#allocation3 + $0x38] sm:$0xff]  ;;  %v2540_v60 = vld [vmem:[#allocation3 + $0x20] sm:$0xff] }
  0x33   :  { %246 = vmatpush1.msra.mxu0 %v2480_v40  ;;  %317 = vmatpush1.msra.mxu1 %v2482_v41  ;;  %3428 = vst [vmem:[#allocation25_spill] sm:$0xff] %v2534_v58  ;;  %3429 = vst [vmem:[#allocation26_spill] sm:$0xff] %v2536_v59  ;;  %v2542_v61 = vld [vmem:[#allocation3 + $0x30] sm:$0xff]  ;;  %v2546_v62 = vld [vmem:[#allocation3 + $0x8] sm:$0xff] }
  0x34   :  { %247 = vmatprep.subr.mxu0 %v2486_v42  ;;  %318 = vmatprep.subr.mxu1 %v2488_v43  ;;  %3430 = vst [vmem:[#allocation27_spill] sm:$0xff] %v2540_v60  ;;  %3431 = vst [vmem:[#allocation28_spill] sm:$0xff] %v2542_v61  ;;  %v2548_v63 = vld [vmem:[#allocation3 + $0x18] sm:$0xff]  ;;  %v2552_v1 = vld [vmem:[#allocation3] sm:$0xff] }
  0x35   :  { %248 = vmatpush1.msra.mxu0 %v2492_v44  ;;  %319 = vmatpush1.msra.mxu1 %v2494_v45  ;;  %3432 = vst [vmem:[#allocation29_spill] sm:$0xff] %v2546_v62  ;;  %3433 = vst [vmem:[#allocation30_spill] sm:$0xff] %v2548_v63  ;;  %v2554_v0 = vld [vmem:[#allocation3 + $0x10] sm:$0xff] }
  0x36   :  { %249 = vmatprep.subr.mxu0 %v2498_v46  ;;  %320 = vmatprep.subr.mxu1 %v2500_v47  ;;  %3434 = vst [vmem:[#allocation31_spill] sm:$0xff] %v2552_v1  ;;  %3435 = vst [vmem:[#allocation32_spill] sm:$0xff] %v2554_v0 }
  0x37   :  { %250 = vmatpush1.msra.mxu0 %v2504_v48  ;;  %321 = vmatpush1.msra.mxu1 %v2506_v49 }
  0x38   :  { %251 = vmatprep.subr.mxu0 %v2510_v50  ;;  %322 = vmatprep.subr.mxu1 %v2512_v51 }
  0x39   :  { %252 = vmatpush1.msra.mxu0 %v2516_v52  ;;  %323 = vmatpush1.msra.mxu1 %v2518_v53 }
  0x3a   :  { %253 = vmatprep.subr.mxu0 %v2522_v54  ;;  %324 = vmatprep.subr.mxu1 %v2524_v55 }
  0x3b   :  { %254 = vmatpush1.msra.mxu0 %v2528_v56  ;;  %325 = vmatpush1.msra.mxu1 %v2530_v57  ;;  %v52_v57 = vld [vmem:[%s3311_s0] sm:$0x1] }
  0x3c   :  { %255 = vmatprep.subr.mxu0 %v2534_v58  ;;  %326 = vmatprep.subr.mxu1 %v2536_v59  ;;  %v3436_v59 = vmov 0.0  }
  0x3d   :  { %256 = vmatpush1.msra.mxu0 %v2540_v60  ;;  %327 = vmatpush1.msra.mxu1 %v2542_v61 }
  0x3e   :  { %257 = vmatprep.subr.mxu0 %v2546_v62  ;;  %328 = vmatprep.subr.mxu1 %v2548_v63  ;;  %v53_v62 = vld [vmem:[%s3311_s0 + $0x1] sm:$0x1] }
  0x3f   :  { %258 = vmatpush1.msra.mxu0 %v2552_v1  ;;  %329 = vmatpush1.msra.mxu1 %v2554_v0 }
  0x40   :  { %292 = vmatmul.mubr.f32.vlgmr.msra.gmra.mxu0 %v3436_v59  ;;  %363 = vmatmul.mubr.f32.vlgmr.msra.gmra.mxu1 %v3436_v59 }
  0x41   :  { %63 = vperm.xlu0 %2056, %v52_v57   ;;  %432 = vmatprep.subr.mxu0 %v2370_v2  ;;  %v56_v57 = vld [vmem:[%s3311_s0 + $0x4] sm:$0x1] }
  0x42   :  { %503 = vmatprep.subr.mxu1 %v2372_v3  ;;  %433 = vmatpush1.msra.mxu0 %v2374_v4 }
  0x43   :  { %504 = vmatpush1.msra.mxu1 %v2378_v5  ;;  %434 = vmatprep.subr.mxu0 %v2380_v6 }
  0x44   :  { %505 = vmatprep.subr.mxu1 %v2382_v7  ;;  %435 = vmatpush1.msra.mxu0 %v2386_v8 }
  0x45   :  { %72 = vperm.xlu0 %2056, %v53_v62   ;;  %506 = vmatpush1.msra.mxu1 %v2388_v9  ;;  %v58_v62 = vld [vmem:[%s3311_s0 + $0x6] sm:$0x1] }
  0x46   :  { %436 = vmatprep.subr.mxu0 %v2390_v10  ;;  %507 = vmatprep.subr.mxu1 %v2394_v11 }
  0x47   :  { %437 = vmatpush1.msra.mxu0 %v2396_v12  ;;  %508 = vmatpush1.msra.mxu1 %v2398_v13 }
  0x48   :  { %438 = vmatprep.subr.mxu0 %v2402_v14  ;;  %509 = vmatprep.subr.mxu1 %v2404_v15 }
  0x49   :  { %99 = vperm.xlu0 %2056, %v56_v57   ;;  %439 = vmatpush1.msra.mxu0 %v2408_v16  ;;  %v3437_v57 = vld [vmem:[#allocation24_spill] sm:$0xff] }
  0x4a   :  { %510 = vmatpush1.msra.mxu1 %v2410_v17  ;;  %440 = vmatprep.subr.mxu0 %v2414_v18 }
  0x4b   :  { %511 = vmatprep.subr.mxu1 %v2416_v19  ;;  %441 = vmatpush1.msra.mxu0 %v2420_v20 }
  0x4c   :  { %512 = vmatpush1.msra.mxu1 %v2422_v21  ;;  %442 = vmatprep.subr.mxu0 %v2426_v22 }
  0x4d   :  { %117 = vperm.xlu0 %2056, %v58_v62   ;;  %513 = vmatprep.subr.mxu1 %v2428_v23  ;;  %v3438_v62 = vld [vmem:[#allocation26_spill] sm:$0xff] }
  0x4e   :  { %443 = vmatpush1.msra.mxu0 %v2432_v24  ;;  %514 = vmatpush1.msra.mxu1 %v2434_v25 }
  0x4f   :  { %444 = vmatprep.subr.mxu0 %v2438_v26  ;;  %515 = vmatprep.subr.mxu1 %v2440_v27 }
  0x50   :  { %445 = vmatpush1.msra.mxu0 %v2444_v28  ;;  %516 = vmatpush1.msra.mxu1 %v2446_v29 }
  0x51   :  { %446 = vmatprep.subr.mxu0 %v2450_v30  ;;  %517 = vmatprep.subr.mxu1 %v2452_v31 }
  0x52   :  { %447 = vmatpush1.msra.mxu0 %v2456_v32  ;;  %518 = vmatpush1.msra.mxu1 %v2458_v33 }
  0x53   :  { %448 = vmatprep.subr.mxu0 %v2462_v34  ;;  %519 = vmatprep.subr.mxu1 %v2464_v35 }
  0x54   :  { %449 = vmatpush1.msra.mxu0 %v2468_v36  ;;  %520 = vmatpush1.msra.mxu1 %v2470_v37 }
  0x55   :  { %450 = vmatprep.subr.mxu0 %v2474_v38  ;;  %521 = vmatprep.subr.mxu1 %v2476_v39 }
  0x56   :  { %451 = vmatpush1.msra.mxu0 %v2480_v40  ;;  %522 = vmatpush1.msra.mxu1 %v2482_v41 }
  0x57   :  { %452 = vmatprep.subr.mxu0 %v2486_v42  ;;  %523 = vmatprep.subr.mxu1 %v2488_v43 }
  0x58   :  { %453 = vmatpush1.msra.mxu0 %v2492_v44  ;;  %524 = vmatpush1.msra.mxu1 %v2494_v45 }
  0x59   :  { %454 = vmatprep.subr.mxu0 %v2498_v46  ;;  %525 = vmatprep.subr.mxu1 %v2500_v47 }
  0x5a   :  { %455 = vmatpush1.msra.mxu0 %v2504_v48  ;;  %526 = vmatpush1.msra.mxu1 %v2506_v49 }
  0x5b   :  { %456 = vmatprep.subr.mxu0 %v2510_v50  ;;  %527 = vmatprep.subr.mxu1 %v2512_v51  ;;  %v3439_v51 = vld [vmem:[#allocation29_spill] sm:$0xff] }
  0x5c   :  { %457 = vmatpush1.msra.mxu0 %v2516_v52  ;;  %528 = vmatpush1.msra.mxu1 %v2518_v53 }
  0x5d   :  { %458 = vmatprep.subr.mxu0 %v2522_v54  ;;  %529 = vmatprep.subr.mxu1 %v2524_v55 }
  0x5e   :  { %459 = vmatpush1.msra.mxu0 %v2528_v56  ;;  %530 = vmatpush1.msra.mxu1 %v3437_v57 }
  0x5f   :  { %460 = vmatprep.subr.mxu0 %v2534_v58  ;;  %531 = vmatprep.subr.mxu1 %v3438_v62  ;;  %v66_v62 = vlaneseq }
  0x60   :  { %461 = vmatpush1.msra.mxu0 %v2540_v60  ;;  %532 = vmatpush1.msra.mxu1 %v2542_v61 }
  0x61   :  { %462 = vmatprep.subr.mxu0 %v3439_v51  ;;  %533 = vmatprep.subr.mxu1 %v2548_v63  ;;  %v67_v60 = vshrl.u32 %v66_v62, 7  ;;  %v2649_v63 = vld [vmem:[%s3312_s1] sm:$0xf]  ;;  %vm2658_vm0 = vcmp.lt.s32.totalorder %v66_v62, 512 }
  0x62   :  { %463 = vmatpush1.msra.mxu0 %v2552_v1  ;;  %496 = vmatprep.mubr.f32.mxu0 %v3436_v59  ;;  %3441 = vst [vmem:[#allocation34_spill] sm:$0xff] %v2649_v63 }
  0x63   :  { %534 = vmatpush1.msra.mxu1 %v2554_v0  ;;  %567 = vmatprep.mubr.f32.mxu1 %v3436_v59  ;;  %v2644_v58 = vsub.s32 0, %v67_v60  ;;  %v2655_v0 = vld [vmem:[%s3313_s2] sm:$0xf] }
  0x64   :  { %637 = vmatprep.subr.mxu0 %v2370_v2  ;;  %708 = vmatprep.subr.mxu1 %v2372_v3  ;;  %3442 = vst [vmem:[#allocation35_spill] sm:$0xff] %v2655_v0  ;;  %v3443_v3 = vmov 0 }
  0x65   :  { %3440 = vst [vmem:[#allocation33_spill] sm:$0xff] %v2644_v58  ;;  %v3444_v3 = vsel %vm2658_vm0, 4294967295, %v3443_v3 }
  0x66   :  { %3445 = vst [vmem:[#allocation36_spill] sm:$0xff] %v3444_v3 }
  0xbc   :  { %v64_v1 = vpop.permute.xlu0 %63 }
  0xbd   :  { %v69_v51 = vrot.slane %v64_v1, %v2644_v58 }
  0xbf   :  { %v133_v2 = vmul.f32 %v69_v51, %v2649_v63 }
  0xc0   :  { %v73_v59 = vpop.permute.xlu0 %72 }
  0xc1   :  { %v142_v61 = vadd.f32 %v2655_v0, %v133_v2  ;;  %v78_v57 = vrot.slane %v73_v59, %v2644_v58 }
  0xc3   :  { %154 = vst.msk [vmem:[#allocation2] sm:$0xf] %vm2658_vm0, %v142_v61  ;;  %v134_v1 = vmul.f32 %v78_v57, %v2649_v63 }
  0xc4   :  { %v100_v56 = vpop.permute.xlu0 %99 }
  0xc5   :  { %v143_v55 = vadd.f32 %v2655_v0, %v134_v1  ;;  %v105_v54 = vrot.slane %v100_v56, %v2644_v58  ;;  %v2324_v56 = vmov 1966171168  }
  0xc6   :  { %v376_v1 = vunpack.c.l.s4 %v2324_v56 }
  0xc7   :  { %155 = vst.msk [vmem:[#allocation2 + $0x4] sm:$0xf] %vm2658_vm0, %v143_v55  ;;  %v137_v51 = vmul.f32 %v105_v54, %v2649_v63 }
  0xc8   :  { %v118_v62 = vpop.permute.xlu0 %117  ;;  %v377_v55 = vunpack.c.0.s8 %v376_v1 }
  0xc9   :  { %v146_v2 = vadd.f32 %v2655_v0, %v137_v51  ;;  %v123_v59 = vrot.slane %v118_v62, %v2644_v58 }
  0xca   :  { %v2680_v52 = vsub.s32 %v377_v55, %v67_v60 }
  0xcb   :  { %158 = vst.msk [vmem:[#allocation2 + $0x10] sm:$0xf] %vm2658_vm0, %v146_v2  ;;  %v139_v61 = vmul.f32 %v123_v59, %v2649_v63 }
  0xcd   :  { %v148_v57 = vadd.f32 %v2655_v0, %v139_v61  ;;  %v162_v61 = vld [vmem:[#allocation2] sm:$0xf] }
  0xcf   :  { %160 = vst.msk [vmem:[#allocation2 + $0x18] sm:$0xf] %vm2658_vm0, %v148_v57 }
 0x100   :  { %v293_v53 = vpop.f32.mrf.mxu0  ;;  %v364_v54 = vpop.f32.mrf.mxu1 }
 0x102   :  { %v295_v51 = vpop.f32.mrf.mxu0  ;;  %v366_v50 = vpop.f32.mrf.mxu1 }
 0x103   :  { %v373_v62 = vcombine.low %v293_v53, %v295_v51  ;;  %v374_v58 = vcombine.low %v364_v54, %v366_v50 }
 0x105   :  { %v381_v2 = vrot.slane %v373_v62, %v2680_v52  ;;  %v388_v59 = vrot.slane %v374_v58, %v2680_v52 }
 0x107   :  { %v389_v63 = vcombine.low %v381_v2, %v388_v59 }
 0x109   :  { %v396_v3 = vrot.slane %v389_v63, %v2680_v52 }
 0x10b   :  { %v398_v57 = vadd.f32 %v396_v3, %v162_v61 }
 0x10d   :  { %v1969_v0 = vmul.f32 -1.442695, %v398_v57  ;;  %v406_v56 = vrot.slane %v398_v57, 1  ;;  %v417_v60 = vrot.slane %v398_v57, 3  ;;  %v414_v48 = vrot.slane %v398_v57, 2 }
 0x10f   :  { %2058 = vpow2.f32 %v1969_v0  ;;  %v1970_v1 = vmul.f32 -1.442695, %v406_v56  ;;  %v1971_v55 = vmul.f32 -1.442695, %v417_v60  ;;  %v3447_v56 = vld [vmem:[#allocation16_spill] sm:$0xff]  ;;  %v3449_v60 = vld [vmem:[#allocation18_spill] sm:$0xff] }
 0x111   :  { %2060 = vpow2.f32 %v1970_v1  ;;  %v3448_v1 = vld [vmem:[#allocation17_spill] sm:$0xff] }
 0x112   :  { %2062 = vpow2.f32 %v1971_v55  ;;  %v3450_v55 = vld [vmem:[#allocation19_spill] sm:$0xff] }
 0x11c   :  { %v2059_v49 = vpop.eup %2058 }
 0x11d   :  { %v402_v53 = vadd.f32 1.0, %v2059_v49 }
 0x11e   :  { %v2061_v50 = vpop.eup %2060 }
 0x11f   :  { %2064 = vrcp.f32 %v402_v53  ;;  %v411_v54 = vadd.f32 1.0, %v2061_v50  ;;  %v2063_v58 = vpop.eup %2062  ;;  %v3451_v53 = vld [vmem:[#allocation20_spill] sm:$0xff]  ;;  %v3452_v50 = vld [vmem:[#allocation21_spill] sm:$0xff] }
 0x120   :  { %2066 = vtanh.f32 %v414_v48  ;;  %v422_v62 = vadd.f32 1.0, %v2063_v58  ;;  %v3446_v48 = vld [vmem:[#allocation15_spill] sm:$0xff] }
 0x121   :  { %2068 = vrcp.f32 %v411_v54  ;;  %v3453_v54 = vld [vmem:[#allocation22_spill] sm:$0xff]  ;;  %v3454_v58 = vld [vmem:[#allocation23_spill] sm:$0xff] }
 0x122   :  { %2070 = vrcp.f32 %v422_v62  ;;  %v3458_v62 = vld [vmem:[#allocation27_spill] sm:$0xff] }
 0x12c   :  { %v2065_v51 = vpop.eup %2064 }
 0x12d   :  { %v2067_v63 = vpop.eup %2066 }
 0x12e   :  { %v2069_v3 = vpop.eup %2068  ;;  %v426_v0 = vmul.f32 %v2067_v63, %v2065_v51  ;;  %v3455_v51 = vld [vmem:[#allocation24_spill] sm:$0xff]  ;;  %v3456_v63 = vld [vmem:[#allocation25_spill] sm:$0xff] }
 0x12f   :  { %v425_v2 = vmul.f32 0.0, %v2069_v3  ;;  %v2071_v61 = vpop.eup %2070  ;;  %v3457_v3 = vld [vmem:[#allocation26_spill] sm:$0xff] }
 0x131   :  { %v2685_v59 = vadd.f32 %v426_v0, %v425_v2  ;;  %v3459_v2 = vld [vmem:[#allocation28_spill] sm:$0xff]  ;;  %v3460_v0 = vld [vmem:[#allocation29_spill] sm:$0xff] }
 0x133   :  { %2072 = vtanh.f32 %v2685_v59 }
 0x140   :  { %v2073_v49 = vpop.eup %2072 }
 0x141   :  { %v429_v57 = vmul.f32 %v2073_v49, %v2071_v61  ;;  %v3461_v61 = vld [vmem:[#allocation30_spill] sm:$0xff]  ;;  %v3462_v49 = vld [vmem:[#allocation31_spill] sm:$0xff] }
 0x143   :  { %497 = vmatmul.mubr.f32.vlgmr.msra.gmra.mxu0 %v429_v57  ;;  %568 = vmatmul.mubr.f32.vlgmr.msra.gmra.mxu1 %v429_v57  ;;  %v3463_v57 = vmov 0.0  }
 0x144   :  { %638 = vmatpush1.msra.mxu0 %v2374_v4  ;;  %709 = vmatpush1.msra.mxu1 %v2378_v5 }
 0x145   :  { %639 = vmatprep.subr.mxu0 %v2380_v6  ;;  %710 = vmatprep.subr.mxu1 %v2382_v7 }
 0x146   :  { %640 = vmatpush1.msra.mxu0 %v2386_v8  ;;  %711 = vmatpush1.msra.mxu1 %v2388_v9 }
 0x147   :  { %641 = vmatprep.subr.mxu0 %v2390_v10  ;;  %712 = vmatprep.subr.mxu1 %v2394_v11 }
 0x148   :  { %642 = vmatpush1.msra.mxu0 %v2396_v12  ;;  %713 = vmatpush1.msra.mxu1 %v2398_v13 }
 0x149   :  { %643 = vmatprep.subr.mxu0 %v2402_v14  ;;  %714 = vmatprep.subr.mxu1 %v2404_v15 }
 0x14a   :  { %644 = vmatpush1.msra.mxu0 %v2408_v16  ;;  %715 = vmatpush1.msra.mxu1 %v2410_v17 }
 0x14b   :  { %645 = vmatprep.subr.mxu0 %v2414_v18  ;;  %716 = vmatprep.subr.mxu1 %v2416_v19 }
 0x14c   :  { %646 = vmatpush1.msra.mxu0 %v2420_v20  ;;  %717 = vmatpush1.msra.mxu1 %v2422_v21 }
 0x14d   :  { %647 = vmatprep.subr.mxu0 %v2426_v22  ;;  %718 = vmatprep.subr.mxu1 %v2428_v23 }
 0x14e   :  { %648 = vmatpush1.msra.mxu0 %v2432_v24  ;;  %719 = vmatpush1.msra.mxu1 %v2434_v25 }
 0x14f   :  { %649 = vmatprep.subr.mxu0 %v2438_v26  ;;  %720 = vmatprep.subr.mxu1 %v2440_v27 }
 0x150   :  { %650 = vmatpush1.msra.mxu0 %v2444_v28  ;;  %721 = vmatpush1.msra.mxu1 %v2446_v29 }
 0x151   :  { %651 = vmatprep.subr.mxu0 %v2450_v30  ;;  %722 = vmatprep.subr.mxu1 %v2452_v31 }
 0x152   :  { %652 = vmatpush1.msra.mxu0 %v2456_v32  ;;  %723 = vmatpush1.msra.mxu1 %v2458_v33 }
 0x153   :  { %653 = vmatprep.subr.mxu0 %v2462_v34  ;;  %724 = vmatprep.subr.mxu1 %v2464_v35 }
 0x154   :  { %654 = vmatpush1.msra.mxu0 %v2468_v36  ;;  %725 = vmatpush1.msra.mxu1 %v2470_v37 }
 0x155   :  { %655 = vmatprep.subr.mxu0 %v2474_v38  ;;  %726 = vmatprep.subr.mxu1 %v2476_v39 }
 0x156   :  { %656 = vmatpush1.msra.mxu0 %v2480_v40  ;;  %727 = vmatpush1.msra.mxu1 %v2482_v41 }
 0x157   :  { %657 = vmatprep.subr.mxu0 %v2486_v42  ;;  %728 = vmatprep.subr.mxu1 %v2488_v43 }
 0x158   :  { %658 = vmatpush1.msra.mxu0 %v2492_v44  ;;  %729 = vmatpush1.msra.mxu1 %v2494_v45 }
 0x159   :  { %659 = vmatprep.subr.mxu0 %v2498_v46  ;;  %730 = vmatprep.subr.mxu1 %v2500_v47 }
 0x15a   :  { %660 = vmatpush1.msra.mxu0 %v3446_v48  ;;  %731 = vmatpush1.msra.mxu1 %v3447_v56 }
 0x15b   :  { %661 = vmatprep.subr.mxu0 %v3448_v1  ;;  %732 = vmatprep.subr.mxu1 %v3449_v60 }
 0x15c   :  { %662 = vmatpush1.msra.mxu0 %v3450_v55  ;;  %733 = vmatpush1.msra.mxu1 %v3451_v53  ;;  %v431_v53 = vld [vmem:[#allocation2 + $0x4] sm:$0xf] }
 0x15d   :  { %663 = vmatprep.subr.mxu0 %v3452_v50  ;;  %734 = vmatprep.subr.mxu1 %v3453_v54  ;;  %v3464_v54 = vld [vmem:[#allocation32_spill] sm:$0xff] }
 0x15e   :  { %664 = vmatpush1.msra.mxu0 %v3454_v58  ;;  %735 = vmatpush1.msra.mxu1 %v3455_v51  ;;  %v3465_v51 = vld [vmem:[#allocation12_spill] sm:$0xff] }
 0x15f   :  { %665 = vmatprep.subr.mxu0 %v3456_v63  ;;  %736 = vmatprep.subr.mxu1 %v3457_v3  ;;  %v3466_v63 = vld [vmem:[#allocation13_spill] sm:$0xff] }
 0x160   :  { %666 = vmatpush1.msra.mxu0 %v3458_v62  ;;  %737 = vmatpush1.msra.mxu1 %v3459_v2  ;;  %v54_v2 = vld [vmem:[%s3311_s0 + $0x2] sm:$0x1] }
 0x161   :  { %667 = vmatprep.subr.mxu0 %v3460_v0  ;;  %738 = vmatprep.subr.mxu1 %v3461_v61  ;;  %v55_v61 = vld [vmem:[%s3311_s0 + $0x3] sm:$0x1] }
 0x162   :  { %668 = vmatpush1.msra.mxu0 %v3462_v49  ;;  %701 = vmatprep.mubr.f32.mxu0 %v3463_v57 }
 0x163   :  { %739 = vmatpush1.msra.mxu1 %v3464_v54  ;;  %772 = vmatprep.mubr.f32.mxu1 %v3463_v57  ;;  %v57_v54 = vld [vmem:[%s3311_s0 + $0x5] sm:$0x1] }
 0x164   :  { %842 = vmatprep.subr.mxu0 %v3465_v51  ;;  %913 = vmatprep.subr.mxu1 %v3466_v63  ;;  %v59_v51 = vld [vmem:[%s3311_s0 + $0x7] sm:$0x1] }
 0x165   :  { %81 = vperm.xlu1 %2057, %v54_v2  }
 0x169   :  { %90 = vperm.xlu1 %2057, %v55_v61  }
 0x16d   :  { %108 = vperm.xlu1 %2057, %v57_v54  }
 0x171   :  { %126 = vperm.xlu1 %2057, %v59_v51  }
 0x203   :  { %v498_v63 = vpop.f32.mrf.mxu0  ;;  %v569_v57 = vpop.f32.mrf.mxu1 }
 0x205   :  { %v500_v49 = vpop.f32.mrf.mxu0  ;;  %v571_v0 = vpop.f32.mrf.mxu1 }
 0x206   :  { %v578_v2 = vcombine.low %v498_v63, %v500_v49  ;;  %v579_v62 = vcombine.low %v569_v57, %v571_v0  ;;  %v82_v57 = vpop.permute.xlu1 %81 }
 0x208   :  { %v586_v3 = vrot.slane %v578_v2, %v2680_v52  ;;  %v593_v61 = vrot.slane %v579_v62, %v2680_v52  ;;  %v3467_v2 = vld [vmem:[#allocation33_spill] sm:$0xff] }
 0x20a   :  { %v594_v58 = vcombine.low %v586_v3, %v593_v61  ;;  %v87_v61 = vrot.slane %v82_v57, %v3467_v2  ;;  %v3482_v57 = vld [vmem:[#allocation25_spill] sm:$0xff] }
 0x20c   :  { %v601_v50 = vrot.slane %v594_v58, %v2680_v52 }
 0x20e   :  { %v603_v54 = vadd.f32 %v601_v50, %v431_v53 }
 0x210   :  { %v1972_v55 = vmul.f32 -1.442695, %v603_v54  ;;  %v611_v60 = vrot.slane %v603_v54, 1  ;;  %v622_v51 = vrot.slane %v603_v54, 3  ;;  %v619_v47 = vrot.slane %v603_v54, 2  ;;  %v3468_v54 = vld [vmem:[#allocation34_spill] sm:$0xff] }
 0x212   :  { %2074 = vpow2.f32 %v1972_v55  ;;  %v1973_v1 = vmul.f32 -1.442695, %v611_v60  ;;  %v1974_v56 = vmul.f32 -1.442695, %v622_v51  ;;  %v135_v51 = vmul.f32 %v87_v61, %v3468_v54  ;;  %v3485_v61 = vld [vmem:[#allocation28_spill] sm:$0xff] }
 0x214   :  { %2076 = vpow2.f32 %v1973_v1 }
 0x215   :  { %2078 = vpow2.f32 %v1974_v56 }
 0x21f   :  { %v2075_v48 = vpop.eup %2074 }
 0x220   :  { %v607_v63 = vadd.f32 1.0, %v2075_v48 }
 0x221   :  { %v2077_v0 = vpop.eup %2076 }
 0x222   :  { %2080 = vrcp.f32 %v607_v63  ;;  %v616_v49 = vadd.f32 1.0, %v2077_v0  ;;  %v2079_v3 = vpop.eup %2078  ;;  %v91_v63 = vpop.permute.xlu1 %90  ;;  %v3469_v0 = vld [vmem:[#allocation35_spill] sm:$0xff] }
 0x223   :  { %2082 = vtanh.f32 %v619_v47  ;;  %v627_v50 = vadd.f32 1.0, %v2079_v3 }
 0x224   :  { %2084 = vrcp.f32 %v616_v49  ;;  %v144_v49 = vadd.f32 %v3469_v0, %v135_v51  ;;  %v3488_v51 = vld [vmem:[#allocation31_spill] sm:$0xff] }
 0x225   :  { %2086 = vrcp.f32 %v627_v50  ;;  %v3478_v50 = vld [vmem:[#allocation21_spill] sm:$0xff] }
 0x226   :  { %156 = vst.msk [vmem:[#allocation2 + $0x8] sm:$0xf] %vm2658_vm0, %v144_v49  ;;  %v3491_v49 = vld [vmem:[#allocation12_spill] sm:$0xff] }
 0x22f   :  { %v2081_v58 = vpop.eup %2080 }
 0x230   :  { %v2083_v62 = vpop.eup %2082 }
 0x231   :  { %v2085_v53 = vpop.eup %2084  ;;  %v631_v60 = vmul.f32 %v2083_v62, %v2081_v58  ;;  %v109_v62 = vpop.permute.xlu1 %108 }
 0x232   :  { %v630_v55 = vmul.f32 %v2085_v53, %v2685_v59  ;;  %v2087_v48 = vpop.eup %2086  ;;  %v96_v59 = vrot.slane %v91_v63, %v3467_v2  ;;  %v3477_v53 = vld [vmem:[#allocation20_spill] sm:$0xff]  ;;  %v3489_v63 = vmov 0.0  }
 0x234   :  { %v2770_v1 = vadd.f32 %v631_v60, %v630_v55  ;;  %v136_v58 = vmul.f32 %v96_v59, %v3468_v54  ;;  %v3479_v55 = vld [vmem:[#allocation22_spill] sm:$0xff]  ;;  %v3480_v60 = vld [vmem:[#allocation23_spill] sm:$0xff]  ;;  %v3492_v59 = vld [vmem:[#allocation13_spill] sm:$0xff] }
 0x236   :  { %2088 = vtanh.f32 %v2770_v1 }
 0x243   :  { %v2089_v56 = vpop.eup %2088 }
 0x244   :  { %v634_v47 = vmul.f32 %v2089_v56, %v2087_v48  ;;  %v3481_v48 = vld [vmem:[#allocation24_spill] sm:$0xff]  ;;  %v3483_v56 = vld [vmem:[#allocation26_spill] sm:$0xff] }
 0x246   :  { %702 = vmatmul.mubr.f32.vlgmr.msra.gmra.mxu0 %v634_v47  ;;  %773 = vmatmul.mubr.f32.vlgmr.msra.gmra.mxu1 %v634_v47  ;;  %v3486_v47 = vld [vmem:[#allocation29_spill] sm:$0xff] }
 0x247   :  { %843 = vmatpush1.msra.mxu0 %v2374_v4  ;;  %914 = vmatpush1.msra.mxu1 %v2378_v5  ;;  %v145_v4 = vadd.f32 %v3469_v0, %v136_v58  ;;  %v114_v5 = vrot.slane %v109_v62, %v3467_v2 }
 0x248   :  { %844 = vmatprep.subr.mxu0 %v2380_v6  ;;  %915 = vmatprep.subr.mxu1 %v2382_v7  ;;  %v127_v7 = vpop.permute.xlu1 %126 }
 0x249   :  { %845 = vmatpush1.msra.mxu0 %v2386_v8  ;;  %916 = vmatpush1.msra.mxu1 %v2388_v9  ;;  %157 = vst.msk [vmem:[#allocation2 + $0xc] sm:$0xf] %vm2658_vm0, %v145_v4  ;;  %v138_v6 = vmul.f32 %v114_v5, %v3468_v54  ;;  %v132_v9 = vrot.slane %v127_v7, %v3467_v2  ;;  %v3484_v2 = vld [vmem:[#allocation27_spill] sm:$0xff] }
 0x24a   :  { %846 = vmatprep.subr.mxu0 %v2390_v10  ;;  %917 = vmatprep.subr.mxu1 %v2394_v11 }
 0x24b   :  { %847 = vmatpush1.msra.mxu0 %v2396_v12  ;;  %918 = vmatpush1.msra.mxu1 %v2398_v13  ;;  %v147_v8 = vadd.f32 %v3469_v0, %v138_v6  ;;  %v140_v10 = vmul.f32 %v132_v9, %v3468_v54  ;;  %v3471_v12 = vld [vmem:[#allocation14_spill] sm:$0xff]  ;;  %v3472_v13 = vld [vmem:[#allocation15_spill] sm:$0xff] }
 0x24c   :  { %848 = vmatprep.subr.mxu0 %v2402_v14  ;;  %919 = vmatprep.subr.mxu1 %v2404_v15  ;;  %v3473_v14 = vld [vmem:[#allocation16_spill] sm:$0xff]  ;;  %v3474_v15 = vld [vmem:[#allocation17_spill] sm:$0xff]  ;;  %v3487_v54 = vld [vmem:[#allocation30_spill] sm:$0xff] }
 0x24d   :  { %849 = vmatpush1.msra.mxu0 %v2408_v16  ;;  %920 = vmatpush1.msra.mxu1 %v2410_v17  ;;  %159 = vst.msk [vmem:[#allocation2 + $0x14] sm:$0xf] %vm2658_vm0, %v147_v8  ;;  %v149_v11 = vadd.f32 %v3469_v0, %v140_v10  ;;  %v3475_v16 = vld [vmem:[#allocation18_spill] sm:$0xff]  ;;  %v3476_v17 = vld [vmem:[#allocation19_spill] sm:$0xff]  ;;  %v3490_v0 = vld [vmem:[#allocation32_spill] sm:$0xff] }
 0x24e   :  { %850 = vmatprep.subr.mxu0 %v2414_v18  ;;  %921 = vmatprep.subr.mxu1 %v2416_v19  ;;  %v636_v10 = vld [vmem:[#allocation2 + $0x8] sm:$0xf] }
 0x24f   :  { %851 = vmatpush1.msra.mxu0 %v2420_v20  ;;  %922 = vmatpush1.msra.mxu1 %v2422_v21  ;;  %161 = vst.msk [vmem:[#allocation2 + $0x1c] sm:$0xf] %vm2658_vm0, %v149_v11 }
 0x250   :  { %852 = vmatprep.subr.mxu0 %v2426_v22  ;;  %923 = vmatprep.subr.mxu1 %v2428_v23 }
 0x251   :  { %853 = vmatpush1.msra.mxu0 %v2432_v24  ;;  %924 = vmatpush1.msra.mxu1 %v2434_v25 }
 0x252   :  { %854 = vmatprep.subr.mxu0 %v2438_v26  ;;  %925 = vmatprep.subr.mxu1 %v2440_v27 }
 0x253   :  { %855 = vmatpush1.msra.mxu0 %v2444_v28  ;;  %926 = vmatpush1.msra.mxu1 %v2446_v29 }
 0x254   :  { %856 = vmatprep.subr.mxu0 %v2450_v30  ;;  %927 = vmatprep.subr.mxu1 %v2452_v31 }
 0x255   :  { %857 = vmatpush1.msra.mxu0 %v2456_v32  ;;  %928 = vmatpush1.msra.mxu1 %v2458_v33 }
 0x256   :  { %858 = vmatprep.subr.mxu0 %v2462_v34  ;;  %929 = vmatprep.subr.mxu1 %v2464_v35 }
 0x257   :  { %859 = vmatpush1.msra.mxu0 %v2468_v36  ;;  %930 = vmatpush1.msra.mxu1 %v2470_v37 }
 0x258   :  { %860 = vmatprep.subr.mxu0 %v2474_v38  ;;  %931 = vmatprep.subr.mxu1 %v2476_v39 }
 0x259   :  { %861 = vmatpush1.msra.mxu0 %v2480_v40  ;;  %932 = vmatpush1.msra.mxu1 %v2482_v41 }
 0x25a   :  { %862 = vmatprep.subr.mxu0 %v2486_v42  ;;  %933 = vmatprep.subr.mxu1 %v2488_v43 }
 0x25b   :  { %863 = vmatpush1.msra.mxu0 %v2492_v44  ;;  %934 = vmatpush1.msra.mxu1 %v2494_v45 }
 0x25c   :  { %864 = vmatprep.subr.mxu0 %v2498_v46  ;;  %935 = vmatprep.subr.mxu1 %v3471_v12 }
 0x25d   :  { %865 = vmatpush1.msra.mxu0 %v3472_v13  ;;  %936 = vmatpush1.msra.mxu1 %v3473_v14 }
 0x25e   :  { %866 = vmatprep.subr.mxu0 %v3474_v15  ;;  %937 = vmatprep.subr.mxu1 %v3475_v16 }
 0x25f   :  { %867 = vmatpush1.msra.mxu0 %v3476_v17  ;;  %938 = vmatpush1.msra.mxu1 %v3477_v53 }
 0x260   :  { %868 = vmatprep.subr.mxu0 %v3478_v50  ;;  %939 = vmatprep.subr.mxu1 %v3479_v55 }
 0x261   :  { %869 = vmatpush1.msra.mxu0 %v3480_v60  ;;  %940 = vmatpush1.msra.mxu1 %v3481_v48 }
 0x262   :  { %870 = vmatprep.subr.mxu0 %v3482_v57  ;;  %941 = vmatprep.subr.mxu1 %v3483_v56 }
 0x263   :  { %871 = vmatpush1.msra.mxu0 %v3484_v2  ;;  %942 = vmatpush1.msra.mxu1 %v3485_v61 }
 0x264   :  { %872 = vmatprep.subr.mxu0 %v3486_v47  ;;  %943 = vmatprep.subr.mxu1 %v3487_v54 }
 0x265   :  { %873 = vmatpush1.msra.mxu0 %v3488_v51  ;;  %906 = vmatprep.mubr.f32.mxu0 %v3489_v63 }
 0x266   :  { %944 = vmatpush1.msra.mxu1 %v3490_v0  ;;  %977 = vmatprep.mubr.f32.mxu1 %v3489_v63 }
 0x267   :  { %1047 = vmatprep.subr.mxu0 %v3491_v49  ;;  %1118 = vmatprep.subr.mxu1 %v3492_v59 }
 0x306   :  { %v703_v3 = vpop.f32.mrf.mxu0  ;;  %v774_v58 = vpop.f32.mrf.mxu1 }
 0x308   :  { %v705_v62 = vpop.f32.mrf.mxu0  ;;  %v776_v4 = vpop.f32.mrf.mxu1 }
 0x309   :  { %v783_v5 = vcombine.low %v703_v3, %v705_v62  ;;  %v784_v6 = vcombine.low %v774_v58, %v776_v4 }
 0x30b   :  { %v791_v7 = vrot.slane %v783_v5, %v2680_v52  ;;  %v798_v8 = vrot.slane %v784_v6, %v2680_v52 }
 0x30d   :  { %v799_v9 = vcombine.low %v791_v7, %v798_v8 }
 0x30f   :  { %v806_v11 = vrot.slane %v799_v9, %v2680_v52 }
 0x311   :  { %v808_v0 = vadd.f32 %v806_v11, %v636_v10  ;;  %v2869_v10 = vld [vmem:[#allocation3 + $0x1f0] sm:$0xff]  ;;  %v2875_v11 = vld [vmem:[#allocation3 + $0x1d8] sm:$0xff] }
 0x313   :  { %v1975_v63 = vmul.f32 -1.442695, %v808_v0  ;;  %v816_v51 = vrot.slane %v808_v0, 1  ;;  %v827_v59 = vrot.slane %v808_v0, 3  ;;  %v824_v61 = vrot.slane %v808_v0, 2 }
 0x315   :  { %2090 = vpow2.f32 %v1975_v63  ;;  %v1976_v49 = vmul.f32 -1.442695, %v816_v51  ;;  %v1977_v54 = vmul.f32 -1.442695, %v827_v59  ;;  %v2881_v59 = vld [vmem:[#allocation3 + $0x1d0] sm:$0xff] }
 0x317   :  { %2092 = vpow2.f32 %v1976_v49  ;;  %v2878_v49 = vld [vmem:[#allocation3 + $0x1c0] sm:$0xff] }
 0x318   :  { %2094 = vpow2.f32 %v1977_v54 }
 0x322   :  { %v2091_v47 = vpop.eup %2090 }
 0x323   :  { %v812_v3 = vadd.f32 1.0, %v2091_v47 }
 0x324   :  { %v2093_v58 = vpop.eup %2092 }
 0x325   :  { %2096 = vrcp.f32 %v812_v3  ;;  %v821_v62 = vadd.f32 1.0, %v2093_v58  ;;  %v2095_v4 = vpop.eup %2094  ;;  %v2884_v3 = vld [vmem:[#allocation3 + $0x1a8] sm:$0xff]  ;;  %v2887_v58 = vld [vmem:[#allocation3 + $0x1b8] sm:$0xff] }
 0x326   :  { %2098 = vtanh.f32 %v824_v61  ;;  %v832_v8 = vadd.f32 1.0, %v2095_v4  ;;  %v2866_v61 = vld [vmem:[#allocation3 + $0x1e0] sm:$0xff]  ;;  %v2893_v4 = vld [vmem:[#allocation3 + $0x1b0] sm:$0xff] }
 0x327   :  { %2100 = vrcp.f32 %v821_v62  ;;  %v2890_v62 = vld [vmem:[#allocation3 + $0x1a0] sm:$0xff] }
 0x328   :  { %2102 = vrcp.f32 %v832_v8  ;;  %v2905_v8 = vld [vmem:[#allocation3 + $0x190] sm:$0xff] }
 0x332   :  { %v2097_v5 = vpop.eup %2096 }
 0x333   :  { %v2099_v6 = vpop.eup %2098 }
 0x334   :  { %v2101_v7 = vpop.eup %2100  ;;  %v836_v51 = vmul.f32 %v2099_v6, %v2097_v5  ;;  %v2896_v5 = vld [vmem:[#allocation3 + $0x188] sm:$0xff]  ;;  %v2899_v6 = vld [vmem:[#allocation3 + $0x198] sm:$0xff] }
 0x335   :  { %v835_v63 = vmul.f32 %v2101_v7, %v2770_v1  ;;  %v2103_v47 = vpop.eup %2102  ;;  %v2872_v1 = vld [vmem:[#allocation3 + $0x1c8] sm:$0xff]  ;;  %v2902_v7 = vld [vmem:[#allocation3 + $0x180] sm:$0xff] }
 0x337   :  { %v2863_v9 = vadd.f32 %v836_v51, %v835_v63  ;;  %v2991_v63 = vld [vmem:[#allocation3 + $0x160] sm:$0xff]  ;;  %v2994_v51 = vld [vmem:[#allocation3 + $0x170] sm:$0xff] }
 0x339   :  { %2104 = vtanh.f32 %v2863_v9 }
 0x346   :  { %v2105_v0 = vpop.eup %2104 }
 0x347   :  { %v839_v54 = vmul.f32 %v2105_v0, %v2103_v47  ;;  %v3000_v47 = vld [vmem:[#allocation3 + $0x158] sm:$0xff]  ;;  %v3003_v0 = vld [vmem:[#allocation3 + $0x140] sm:$0xff] }
 0x349   :  { %907 = vmatmul.mubr.f32.vlgmr.msra.gmra.mxu0 %v839_v54  ;;  %978 = vmatmul.mubr.f32.vlgmr.msra.gmra.mxu1 %v839_v54  ;;  %v3006_v54 = vld [vmem:[#allocation3 + $0x150] sm:$0xff] }
 0x34a   :  { %1048 = vmatpush1.msra.mxu0 %v2866_v61  ;;  %1119 = vmatpush1.msra.mxu1 %v2869_v10 }
 0x34b   :  { %1049 = vmatprep.subr.mxu0 %v2872_v1  ;;  %1120 = vmatprep.subr.mxu1 %v2875_v11 }
 0x34c   :  { %1050 = vmatpush1.msra.mxu0 %v2878_v49  ;;  %1121 = vmatpush1.msra.mxu1 %v2881_v59 }
 0x34d   :  { %1051 = vmatprep.subr.mxu0 %v2884_v3  ;;  %1122 = vmatprep.subr.mxu1 %v2887_v58 }
 0x34e   :  { %1052 = vmatpush1.msra.mxu0 %v2890_v62  ;;  %1123 = vmatpush1.msra.mxu1 %v2893_v4 }
 0x34f   :  { %1053 = vmatprep.subr.mxu0 %v2896_v5  ;;  %1124 = vmatprep.subr.mxu1 %v2899_v6 }
 0x350   :  { %1054 = vmatpush1.msra.mxu0 %v2902_v7  ;;  %1125 = vmatpush1.msra.mxu1 %v2905_v8 }
 0x351   :  { %1055 = vmatprep.subr.mxu0 %v2414_v18  ;;  %1126 = vmatprep.subr.mxu1 %v2416_v19  ;;  %v3493_v18 = vld [vmem:[#allocation28_spill] sm:$0xff]  ;;  %v3494_v19 = vld [vmem:[#allocation29_spill] sm:$0xff] }
 0x352   :  { %1056 = vmatpush1.msra.mxu0 %v2420_v20  ;;  %1127 = vmatpush1.msra.mxu1 %v2422_v21  ;;  %v3495_v20 = vld [vmem:[#allocation30_spill] sm:$0xff]  ;;  %v3496_v21 = vld [vmem:[#allocation31_spill] sm:$0xff] }
 0x353   :  { %1057 = vmatprep.subr.mxu0 %v2426_v22  ;;  %1128 = vmatprep.subr.mxu1 %v2428_v23  ;;  %v3497_v22 = vmov 0.0   ;;  %v3498_v23 = vld [vmem:[#allocation32_spill] sm:$0xff] }
 0x354   :  { %1058 = vmatpush1.msra.mxu0 %v2432_v24  ;;  %1129 = vmatpush1.msra.mxu1 %v2434_v25  ;;  %v2958_v24 = vld [vmem:[#allocation3 + $0x1e8] sm:$0xff]  ;;  %v2961_v25 = vld [vmem:[#allocation3 + $0x1f8] sm:$0xff] }
 0x355   :  { %1059 = vmatprep.subr.mxu0 %v2438_v26  ;;  %1130 = vmatprep.subr.mxu1 %v2440_v27  ;;  %3499 = vst [vmem:[#allocation33_spill] sm:$0xff] %v2958_v24  ;;  %3500 = vst [vmem:[#allocation34_spill] sm:$0xff] %v2961_v25 }
 0x356   :  { %1060 = vmatpush1.msra.mxu0 %v2444_v28  ;;  %1131 = vmatpush1.msra.mxu1 %v2446_v29 }
 0x357   :  { %1061 = vmatprep.subr.mxu0 %v2450_v30  ;;  %1132 = vmatprep.subr.mxu1 %v2452_v31 }
 0x358   :  { %1062 = vmatpush1.msra.mxu0 %v2456_v32  ;;  %1133 = vmatpush1.msra.mxu1 %v2458_v33 }
 0x359   :  { %1063 = vmatprep.subr.mxu0 %v2462_v34  ;;  %1134 = vmatprep.subr.mxu1 %v2464_v35 }
 0x35a   :  { %1064 = vmatpush1.msra.mxu0 %v2468_v36  ;;  %1135 = vmatpush1.msra.mxu1 %v2470_v37  ;;  %v841_v36 = vld [vmem:[#allocation2 + $0xc] sm:$0xf] }
 0x35b   :  { %1065 = vmatprep.subr.mxu0 %v2474_v38  ;;  %1136 = vmatprep.subr.mxu1 %v2476_v39 }
 0x35c   :  { %1066 = vmatpush1.msra.mxu0 %v2480_v40  ;;  %1137 = vmatpush1.msra.mxu1 %v2482_v41 }
 0x35d   :  { %1067 = vmatprep.subr.mxu0 %v2486_v42  ;;  %1138 = vmatprep.subr.mxu1 %v2488_v43 }
 0x35e   :  { %1068 = vmatpush1.msra.mxu0 %v2492_v44  ;;  %1139 = vmatpush1.msra.mxu1 %v2494_v45 }
 0x35f   :  { %1069 = vmatprep.subr.mxu0 %v2498_v46  ;;  %1140 = vmatprep.subr.mxu1 %v3471_v12 }
 0x360   :  { %1070 = vmatpush1.msra.mxu0 %v3472_v13  ;;  %1141 = vmatpush1.msra.mxu1 %v3473_v14 }
 0x361   :  { %1071 = vmatprep.subr.mxu0 %v3474_v15  ;;  %1142 = vmatprep.subr.mxu1 %v3475_v16 }
 0x362   :  { %1072 = vmatpush1.msra.mxu0 %v3476_v17  ;;  %1143 = vmatpush1.msra.mxu1 %v3477_v53 }
 0x363   :  { %1073 = vmatprep.subr.mxu0 %v3478_v50  ;;  %1144 = vmatprep.subr.mxu1 %v3479_v55 }
 0x364   :  { %1074 = vmatpush1.msra.mxu0 %v3480_v60  ;;  %1145 = vmatpush1.msra.mxu1 %v3481_v48 }
 0x365   :  { %1075 = vmatprep.subr.mxu0 %v3482_v57  ;;  %1146 = vmatprep.subr.mxu1 %v3483_v56  ;;  %v2985_v56 = vld [vmem:[#allocation3 + $0x168] sm:$0xff] }
 0x366   :  { %1076 = vmatpush1.msra.mxu0 %v3484_v2  ;;  %1147 = vmatpush1.msra.mxu1 %v3493_v18  ;;  %v2988_v2 = vld [vmem:[#allocation3 + $0x178] sm:$0xff]  ;;  %v3009_v18 = vld [vmem:[#allocation3 + $0x128] sm:$0xff] }
 0x367   :  { %1077 = vmatprep.subr.mxu0 %v3494_v19  ;;  %1148 = vmatprep.subr.mxu1 %v3495_v20  ;;  %v3012_v19 = vld [vmem:[#allocation3 + $0x138] sm:$0xff]  ;;  %v3015_v20 = vld [vmem:[#allocation3 + $0x120] sm:$0xff] }
 0x368   :  { %1078 = vmatpush1.msra.mxu0 %v3496_v21  ;;  %1111 = vmatprep.mubr.f32.mxu0 %v3497_v22  ;;  %v3018_v21 = vld [vmem:[#allocation3 + $0x130] sm:$0xff] }
 0x369   :  { %1149 = vmatpush1.msra.mxu1 %v3498_v23  ;;  %1182 = vmatprep.mubr.f32.mxu1 %v3497_v22  ;;  %v3021_v23 = vld [vmem:[#allocation3 + $0x108] sm:$0xff] }
 0x36a   :  { %1252 = vmatprep.subr.mxu0 %v2958_v24  ;;  %1323 = vmatprep.subr.mxu1 %v2961_v25 }
 0x409   :  { %v908_v26 = vpop.f32.mrf.mxu0  ;;  %v979_v27 = vpop.f32.mrf.mxu1 }
 0x40b   :  { %v910_v28 = vpop.f32.mrf.mxu0  ;;  %v981_v29 = vpop.f32.mrf.mxu1 }
 0x40c   :  { %v988_v30 = vcombine.low %v908_v26, %v910_v28  ;;  %v989_v31 = vcombine.low %v979_v27, %v981_v29  ;;  %v3024_v26 = vld [vmem:[#allocation3 + $0x118] sm:$0xff]  ;;  %v3027_v27 = vld [vmem:[#allocation3 + $0x100] sm:$0xff]  ;;  %v3030_v28 = vld [vmem:[#allocation3 + $0x110] sm:$0xff] }
 0x40d   :  { %v3033_v29 = vld [vmem:[#allocation3 + $0xe8] sm:$0xff] }
 0x40e   :  { %v996_v32 = vrot.slane %v988_v30, %v2680_v52  ;;  %v1003_v33 = vrot.slane %v989_v31, %v2680_v52  ;;  %v3036_v30 = vld [vmem:[#allocation3 + $0xf8] sm:$0xff]  ;;  %v3039_v31 = vld [vmem:[#allocation3 + $0xe0] sm:$0xff] }
 0x410   :  { %v1004_v34 = vcombine.low %v996_v32, %v1003_v33  ;;  %v3042_v32 = vld [vmem:[#allocation3 + $0xf0] sm:$0xff]  ;;  %v3045_v33 = vld [vmem:[#allocation3 + $0xc8] sm:$0xff] }
 0x412   :  { %v1011_v35 = vrot.slane %v1004_v34, %v2680_v52  ;;  %v3048_v34 = vld [vmem:[#allocation3 + $0xd8] sm:$0xff] }
 0x414   :  { %v1013_v37 = vadd.f32 %v1011_v35, %v841_v36  ;;  %v3051_v35 = vld [vmem:[#allocation3 + $0xc0] sm:$0xff]  ;;  %v3054_v36 = vld [vmem:[#allocation3 + $0xd0] sm:$0xff] }
 0x416   :  { %v1978_v38 = vmul.f32 -1.442695, %v1013_v37  ;;  %v1021_v39 = vrot.slane %v1013_v37, 1  ;;  %v1032_v41 = vrot.slane %v1013_v37, 3  ;;  %v1029_v44 = vrot.slane %v1013_v37, 2  ;;  %v3057_v37 = vld [vmem:[#allocation3 + $0xa8] sm:$0xff] }
 0x418   :  { %2106 = vpow2.f32 %v1978_v38  ;;  %v1979_v40 = vmul.f32 -1.442695, %v1021_v39  ;;  %v1980_v42 = vmul.f32 -1.442695, %v1032_v41  ;;  %v3060_v38 = vld [vmem:[#allocation3 + $0xb8] sm:$0xff]  ;;  %v3063_v39 = vld [vmem:[#allocation3 + $0xa0] sm:$0xff] }
 0x419   :  { %v3069_v41 = vld [vmem:[#allocation3 + $0x88] sm:$0xff] }
 0x41a   :  { %2108 = vpow2.f32 %v1979_v40  ;;  %v3066_v40 = vld [vmem:[#allocation3 + $0xb0] sm:$0xff] }
 0x41b   :  { %2110 = vpow2.f32 %v1980_v42  ;;  %v3072_v42 = vld [vmem:[#allocation3 + $0x98] sm:$0xff] }
 0x41c   :  { %3501 = vst [vmem:[#allocation35_spill] sm:$0xff] %v3072_v42 }
 0x425   :  { %v2107_v43 = vpop.eup %2106 }
 0x426   :  { %v1017_v45 = vadd.f32 1.0, %v2107_v43  ;;  %v3075_v43 = vld [vmem:[#allocation3 + $0x80] sm:$0xff] }
 0x427   :  { %v2109_v46 = vpop.eup %2108  ;;  %3502 = vst [vmem:[#allocation36_spill] sm:$0xff] %v3075_v43 }
 0x428   :  { %2112 = vrcp.f32 %v1017_v45  ;;  %v1026_v12 = vadd.f32 1.0, %v2109_v46  ;;  %v2111_v13 = vpop.eup %2110  ;;  %v3081_v45 = vld [vmem:[#allocation3 + $0x68] sm:$0xff]  ;;  %v3084_v46 = vld [vmem:[#allocation3 + $0x78] sm:$0xff] }
 0x429   :  { %2114 = vtanh.f32 %v1029_v44  ;;  %v1037_v17 = vadd.f32 1.0, %v2111_v13  ;;  %v3078_v44 = vld [vmem:[#allocation3 + $0x90] sm:$0xff]  ;;  %3504 = vst [vmem:[#allocation15_spill] sm:$0xff] %v3081_v45  ;;  %3505 = vst [vmem:[#allocation16_spill] sm:$0xff] %v3084_v46 }
 0x42a   :  { %2116 = vrcp.f32 %v1026_v12  ;;  %3503 = vst [vmem:[#allocation14_spill] sm:$0xff] %v3078_v44  ;;  %v3087_v12 = vld [vmem:[#allocation3 + $0x60] sm:$0xff]  ;;  %v3090_v13 = vld [vmem:[#allocation3 + $0x70] sm:$0xff] }
 0x42b   :  { %2118 = vrcp.f32 %v1037_v17  ;;  %3506 = vst [vmem:[#allocation17_spill] sm:$0xff] %v3087_v12  ;;  %3507 = vst [vmem:[#allocation18_spill] sm:$0xff] %v3090_v13  ;;  %v3102_v17 = vld [vmem:[#allocation3 + $0x50] sm:$0xff] }
 0x42c   :  { %3511 = vst [vmem:[#allocation22_spill] sm:$0xff] %v3102_v17 }
 0x435   :  { %v2113_v14 = vpop.eup %2112 }
 0x436   :  { %v2115_v15 = vpop.eup %2114 }
 0x437   :  { %v2117_v16 = vpop.eup %2116  ;;  %v1041_v50 = vmul.f32 %v2115_v15, %v2113_v14  ;;  %v3093_v14 = vld [vmem:[#allocation3 + $0x48] sm:$0xff]  ;;  %v3096_v15 = vld [vmem:[#allocation3 + $0x58] sm:$0xff] }
 0x438   :  { %v1040_v53 = vmul.f32 %v2117_v16, %v2863_v9  ;;  %v2119_v60 = vpop.eup %2118  ;;  %v2997_v9 = vld [vmem:[#allocation3 + $0x148] sm:$0xff]  ;;  %3508 = vst [vmem:[#allocation19_spill] sm:$0xff] %v3093_v14  ;;  %3509 = vst [vmem:[#allocation20_spill] sm:$0xff] %v3096_v15  ;;  %v3099_v16 = vld [vmem:[#allocation3 + $0x40] sm:$0xff] }
 0x439   :  { %3510 = vst [vmem:[#allocation21_spill] sm:$0xff] %v3099_v16 }
 0x43a   :  { %v2968_v55 = vadd.f32 %v1041_v50, %v1040_v53  ;;  %v3105_v53 = vld [vmem:[#allocation3 + $0x28] sm:$0xff]  ;;  %v3108_v50 = vld [vmem:[#allocation3 + $0x38] sm:$0xff] }
 0x43b   :  { %3512 = vst [vmem:[#allocation23_spill] sm:$0xff] %v3105_v53  ;;  %3513 = vst [vmem:[#allocation24_spill] sm:$0xff] %v3108_v50 }
 0x43c   :  { %2120 = vtanh.f32 %v2968_v55 }
 0x449   :  { %v2121_v48 = vpop.eup %2120 }
 0x44a   :  { %v1044_v57 = vmul.f32 %v2121_v48, %v2119_v60  ;;  %v3111_v60 = vld [vmem:[#allocation3 + $0x20] sm:$0xff]  ;;  %v3114_v48 = vld [vmem:[#allocation3 + $0x30] sm:$0xff] }
 0x44b   :  { %3514 = vst [vmem:[#allocation25_spill] sm:$0xff] %v3111_v60  ;;  %3515 = vst [vmem:[#allocation26_spill] sm:$0xff] %v3114_v48 }
 0x44c   :  { %1112 = vmatmul.mubr.f32.vlgmr.msra.gmra.mxu0 %v1044_v57  ;;  %1183 = vmatmul.mubr.f32.vlgmr.msra.gmra.mxu1 %v1044_v57  ;;  %v3117_v57 = vld [vmem:[#allocation3 + $0x8] sm:$0xff] }
 0x44d   :  { %1253 = vmatpush1.msra.mxu0 %v2866_v61  ;;  %1324 = vmatpush1.msra.mxu1 %v2869_v10  ;;  %3516 = vst [vmem:[#allocation27_spill] sm:$0xff] %v3117_v57 }
 0x44e   :  { %1254 = vmatprep.subr.mxu0 %v2872_v1  ;;  %1325 = vmatprep.subr.mxu1 %v2875_v11 }
 0x44f   :  { %1255 = vmatpush1.msra.mxu0 %v2878_v49  ;;  %1326 = vmatpush1.msra.mxu1 %v2881_v59 }
 0x450   :  { %1256 = vmatprep.subr.mxu0 %v2884_v3  ;;  %1327 = vmatprep.subr.mxu1 %v2887_v58 }
 0x451   :  { %1257 = vmatpush1.msra.mxu0 %v2890_v62  ;;  %1328 = vmatpush1.msra.mxu1 %v2893_v4 }
 0x452   :  { %1258 = vmatprep.subr.mxu0 %v2896_v5  ;;  %1329 = vmatprep.subr.mxu1 %v2899_v6 }
 0x453   :  { %1259 = vmatpush1.msra.mxu0 %v2902_v7  ;;  %1330 = vmatpush1.msra.mxu1 %v2905_v8 }
 0x454   :  { %1260 = vmatprep.subr.mxu0 %v2985_v56  ;;  %1331 = vmatprep.subr.mxu1 %v2988_v2 }
 0x455   :  { %1261 = vmatpush1.msra.mxu0 %v2991_v63  ;;  %1332 = vmatpush1.msra.mxu1 %v2994_v51 }
 0x456   :  { %1262 = vmatprep.subr.mxu0 %v2997_v9  ;;  %1333 = vmatprep.subr.mxu1 %v3000_v47 }
 0x457   :  { %1263 = vmatpush1.msra.mxu0 %v3003_v0  ;;  %1334 = vmatpush1.msra.mxu1 %v3006_v54 }
 0x458   :  { %1264 = vmatprep.subr.mxu0 %v3009_v18  ;;  %1335 = vmatprep.subr.mxu1 %v3012_v19 }
 0x459   :  { %1265 = vmatpush1.msra.mxu0 %v3015_v20  ;;  %1336 = vmatpush1.msra.mxu1 %v3018_v21 }
 0x45a   :  { %1266 = vmatprep.subr.mxu0 %v3021_v23  ;;  %1337 = vmatprep.subr.mxu1 %v3024_v26 }
 0x45b   :  { %1267 = vmatpush1.msra.mxu0 %v3027_v27  ;;  %1338 = vmatpush1.msra.mxu1 %v3030_v28 }
 0x45c   :  { %1268 = vmatprep.subr.mxu0 %v3033_v29  ;;  %1339 = vmatprep.subr.mxu1 %v3036_v30 }
 0x45d   :  { %1269 = vmatpush1.msra.mxu0 %v3039_v31  ;;  %1340 = vmatpush1.msra.mxu1 %v3042_v32 }
 0x45e   :  { %1270 = vmatprep.subr.mxu0 %v3045_v33  ;;  %1341 = vmatprep.subr.mxu1 %v3048_v34 }
 0x45f   :  { %1271 = vmatpush1.msra.mxu0 %v3051_v35  ;;  %1342 = vmatpush1.msra.mxu1 %v3054_v36 }
 0x460   :  { %1272 = vmatprep.subr.mxu0 %v3057_v37  ;;  %1343 = vmatprep.subr.mxu1 %v3060_v38 }
 0x461   :  { %1273 = vmatpush1.msra.mxu0 %v3063_v39  ;;  %1344 = vmatpush1.msra.mxu1 %v3066_v40 }
 0x462   :  { %1274 = vmatprep.subr.mxu0 %v3069_v41  ;;  %1345 = vmatprep.subr.mxu1 %v3072_v42 }
 0x463   :  { %1275 = vmatpush1.msra.mxu0 %v3075_v43  ;;  %1346 = vmatpush1.msra.mxu1 %v3078_v44 }
 0x464   :  { %1276 = vmatprep.subr.mxu0 %v3081_v45  ;;  %1347 = vmatprep.subr.mxu1 %v3084_v46 }
 0x465   :  { %1277 = vmatpush1.msra.mxu0 %v3087_v12  ;;  %1348 = vmatpush1.msra.mxu1 %v3090_v13 }
 0x466   :  { %1278 = vmatprep.subr.mxu0 %v3093_v14  ;;  %1349 = vmatprep.subr.mxu1 %v3096_v15 }
 0x467   :  { %1279 = vmatpush1.msra.mxu0 %v3099_v16  ;;  %1350 = vmatpush1.msra.mxu1 %v3102_v17  ;;  %v3120_v17 = vld [vmem:[#allocation3 + $0x18] sm:$0xff] }
 0x468   :  { %1280 = vmatprep.subr.mxu0 %v3105_v53  ;;  %1351 = vmatprep.subr.mxu1 %v3108_v50  ;;  %3517 = vst [vmem:[#allocation12_spill] sm:$0xff] %v3120_v17  ;;  %v3123_v53 = vld [vmem:[#allocation3] sm:$0xff]  ;;  %v3127_v50 = vld [vmem:[#allocation3 + $0x10] sm:$0xff] }
 0x469   :  { %1281 = vmatpush1.msra.mxu0 %v3111_v60  ;;  %1352 = vmatpush1.msra.mxu1 %v3114_v48  ;;  %3518 = vst [vmem:[#allocation13_spill] sm:$0xff] %v3123_v53  ;;  %3519 = vst [vmem:[#allocation28_spill] sm:$0xff] %v3127_v50 }
 0x46a   :  { %1282 = vmatprep.subr.mxu0 %v3117_v57  ;;  %1353 = vmatprep.subr.mxu1 %v3120_v17 }
 0x46b   :  { %1283 = vmatpush1.msra.mxu0 %v3123_v53  ;;  %1316 = vmatprep.mubr.f32.mxu0 %v3497_v22 }
 0x46c   :  { %1354 = vmatpush1.msra.mxu1 %v3127_v50  ;;  %1387 = vmatprep.mubr.f32.mxu1 %v3497_v22  ;;  %v1046_v50 = vld [vmem:[#allocation2 + $0x10] sm:$0xf] }
 0x46d   :  { %1457 = vmatprep.subr.mxu0 %v2958_v24  ;;  %1528 = vmatprep.subr.mxu1 %v2961_v25 }
 0x50c   :  { %v1113_v57 = vpop.f32.mrf.mxu0  ;;  %v1184_v48 = vpop.f32.mrf.mxu1 }
 0x50e   :  { %v1115_v60 = vpop.f32.mrf.mxu0  ;;  %v1186_v17 = vpop.f32.mrf.mxu1 }
 0x50f   :  { %v1193_v16 = vcombine.low %v1113_v57, %v1115_v60  ;;  %v1194_v15 = vcombine.low %v1184_v48, %v1186_v17  ;;  %v3524_v48 = vld [vmem:[#allocation16_spill] sm:$0xff]  ;;  %v3525_v57 = vld [vmem:[#allocation17_spill] sm:$0xff] }
 0x511   :  { %v1201_v53 = vrot.slane %v1193_v16, %v2680_v52  ;;  %v1208_v14 = vrot.slane %v1194_v15, %v2680_v52 }
 0x513   :  { %v1209_v13 = vcombine.low %v1201_v53, %v1208_v14 }
 0x515   :  { %v1216_v12 = vrot.slane %v1209_v13, %v2680_v52 }
 0x517   :  { %v1218_v46 = vadd.f32 %v1216_v12, %v1046_v50  ;;  %v3523_v50 = vld [vmem:[#allocation15_spill] sm:$0xff] }
 0x519   :  { %v1981_v22 = vmul.f32 -1.442695, %v1218_v46  ;;  %v1226_v45 = vrot.slane %v1218_v46, 1  ;;  %v1237_v25 = vrot.slane %v1218_v46, 3  ;;  %v1234_v42 = vrot.slane %v1218_v46, 2  ;;  %v3522_v46 = vld [vmem:[#allocation14_spill] sm:$0xff] }
 0x51b   :  { %2122 = vpow2.f32 %v1981_v22  ;;  %v1982_v24 = vmul.f32 -1.442695, %v1226_v45  ;;  %v1983_v44 = vmul.f32 -1.442695, %v1237_v25 }
 0x51d   :  { %2124 = vpow2.f32 %v1982_v24 }
 0x51e   :  { %2126 = vpow2.f32 %v1983_v44 }
 0x528   :  { %v2123_v43 = vpop.eup %2122 }
 0x529   :  { %v1222_v60 = vadd.f32 1.0, %v2123_v43 }
 0x52a   :  { %v2125_v17 = vpop.eup %2124 }
 0x52b   :  { %2128 = vrcp.f32 %v1222_v60  ;;  %v1231_v16 = vadd.f32 1.0, %v2125_v17  ;;  %v2127_v14 = vpop.eup %2126  ;;  %v3526_v60 = vld [vmem:[#allocation18_spill] sm:$0xff]  ;;  %v3527_v17 = vld [vmem:[#allocation19_spill] sm:$0xff] }
 0x52c   :  { %2130 = vtanh.f32 %v1234_v42  ;;  %v1242_v53 = vadd.f32 1.0, %v2127_v14  ;;  %v3521_v42 = vld [vmem:[#allocation36_spill] sm:$0xff]  ;;  %v3529_v14 = vld [vmem:[#allocation21_spill] sm:$0xff] }
 0x52d   :  { %2132 = vrcp.f32 %v1231_v16  ;;  %v3528_v16 = vld [vmem:[#allocation20_spill] sm:$0xff] }
 0x52e   :  { %2134 = vrcp.f32 %v1242_v53  ;;  %v3533_v53 = vld [vmem:[#allocation25_spill] sm:$0xff] }
 0x538   :  { %v2129_v13 = vpop.eup %2128 }
 0x539   :  { %v2131_v15 = vpop.eup %2130 }
 0x53a   :  { %v2133_v12 = vpop.eup %2132  ;;  %v1246_v45 = vmul.f32 %v2131_v15, %v2129_v13  ;;  %v3530_v13 = vld [vmem:[#allocation22_spill] sm:$0xff]  ;;  %v3531_v15 = vld [vmem:[#allocation23_spill] sm:$0xff] }
 0x53b   :  { %v1245_v22 = vmul.f32 %v2133_v12, %v2968_v55  ;;  %v2135_v25 = vpop.eup %2134  ;;  %v3520_v55 = vld [vmem:[#allocation35_spill] sm:$0xff]  ;;  %v3532_v12 = vld [vmem:[#allocation24_spill] sm:$0xff] }
 0x53d   :  { %v3137_v24 = vadd.f32 %v1246_v45, %v1245_v22  ;;  %v3534_v22 = vld [vmem:[#allocation26_spill] sm:$0xff]  ;;  %v3535_v45 = vld [vmem:[#allocation27_spill] sm:$0xff] }
 0x53f   :  { %2136 = vtanh.f32 %v3137_v24 }
 0x54c   :  { %v2137_v43 = vpop.eup %2136 }
 0x54d   :  { %v1249_v44 = vmul.f32 %v2137_v43, %v2135_v25  ;;  %v3536_v25 = vld [vmem:[#allocation12_spill] sm:$0xff]  ;;  %v3537_v43 = vld [vmem:[#allocation13_spill] sm:$0xff] }
 0x54f   :  { %1317 = vmatmul.mubr.f32.vlgmr.msra.gmra.mxu0 %v1249_v44  ;;  %1388 = vmatmul.mubr.f32.vlgmr.msra.gmra.mxu1 %v1249_v44  ;;  %v3538_v44 = vmov 0.0  }
 0x550   :  { %1458 = vmatpush1.msra.mxu0 %v2866_v61  ;;  %1529 = vmatpush1.msra.mxu1 %v2869_v10 }
 0x551   :  { %1459 = vmatprep.subr.mxu0 %v2872_v1  ;;  %1530 = vmatprep.subr.mxu1 %v2875_v11 }
 0x552   :  { %1460 = vmatpush1.msra.mxu0 %v2878_v49  ;;  %1531 = vmatpush1.msra.mxu1 %v2881_v59 }
 0x553   :  { %1461 = vmatprep.subr.mxu0 %v2884_v3  ;;  %1532 = vmatprep.subr.mxu1 %v2887_v58 }
 0x554   :  { %1462 = vmatpush1.msra.mxu0 %v2890_v62  ;;  %1533 = vmatpush1.msra.mxu1 %v2893_v4 }
 0x555   :  { %1463 = vmatprep.subr.mxu0 %v2896_v5  ;;  %1534 = vmatprep.subr.mxu1 %v2899_v6 }
 0x556   :  { %1464 = vmatpush1.msra.mxu0 %v2902_v7  ;;  %1535 = vmatpush1.msra.mxu1 %v2905_v8 }
 0x557   :  { %1465 = vmatprep.subr.mxu0 %v2985_v56  ;;  %1536 = vmatprep.subr.mxu1 %v2988_v2 }
 0x558   :  { %1466 = vmatpush1.msra.mxu0 %v2991_v63  ;;  %1537 = vmatpush1.msra.mxu1 %v2994_v51 }
 0x559   :  { %1467 = vmatprep.subr.mxu0 %v2997_v9  ;;  %1538 = vmatprep.subr.mxu1 %v3000_v47 }
 0x55a   :  { %1468 = vmatpush1.msra.mxu0 %v3003_v0  ;;  %1539 = vmatpush1.msra.mxu1 %v3006_v54 }
 0x55b   :  { %1469 = vmatprep.subr.mxu0 %v3009_v18  ;;  %1540 = vmatprep.subr.mxu1 %v3012_v19 }
 0x55c   :  { %1470 = vmatpush1.msra.mxu0 %v3015_v20  ;;  %1541 = vmatpush1.msra.mxu1 %v3018_v21 }
 0x55d   :  { %1471 = vmatprep.subr.mxu0 %v3021_v23  ;;  %1542 = vmatprep.subr.mxu1 %v3024_v26 }
 0x55e   :  { %1472 = vmatpush1.msra.mxu0 %v3027_v27  ;;  %1543 = vmatpush1.msra.mxu1 %v3030_v28 }
 0x55f   :  { %1473 = vmatprep.subr.mxu0 %v3033_v29  ;;  %1544 = vmatprep.subr.mxu1 %v3036_v30 }
 0x560   :  { %1474 = vmatpush1.msra.mxu0 %v3039_v31  ;;  %1545 = vmatpush1.msra.mxu1 %v3042_v32 }
 0x561   :  { %1475 = vmatprep.subr.mxu0 %v3045_v33  ;;  %1546 = vmatprep.subr.mxu1 %v3048_v34 }
 0x562   :  { %1476 = vmatpush1.msra.mxu0 %v3051_v35  ;;  %1547 = vmatpush1.msra.mxu1 %v3054_v36 }
 0x563   :  { %1477 = vmatprep.subr.mxu0 %v3057_v37  ;;  %1548 = vmatprep.subr.mxu1 %v3060_v38 }
 0x564   :  { %1478 = vmatpush1.msra.mxu0 %v3063_v39  ;;  %1549 = vmatpush1.msra.mxu1 %v3066_v40 }
 0x565   :  { %1479 = vmatprep.subr.mxu0 %v3069_v41  ;;  %1550 = vmatprep.subr.mxu1 %v3520_v55 }
 0x566   :  { %1480 = vmatpush1.msra.mxu0 %v3521_v42  ;;  %1551 = vmatpush1.msra.mxu1 %v3522_v46 }
 0x567   :  { %1481 = vmatprep.subr.mxu0 %v3523_v50  ;;  %1552 = vmatprep.subr.mxu1 %v3524_v48 }
 0x568   :  { %1482 = vmatpush1.msra.mxu0 %v3525_v57  ;;  %1553 = vmatpush1.msra.mxu1 %v3526_v60 }
 0x569   :  { %1483 = vmatprep.subr.mxu0 %v3527_v17  ;;  %1554 = vmatprep.subr.mxu1 %v3528_v16  ;;  %v3539_v16 = vld [vmem:[#allocation28_spill] sm:$0xff] }
 0x56a   :  { %1484 = vmatpush1.msra.mxu0 %v3529_v14  ;;  %1555 = vmatpush1.msra.mxu1 %v3530_v13  ;;  %v3540_v13 = vld [vmem:[#allocation33_spill] sm:$0xff] }
 0x56b   :  { %1485 = vmatprep.subr.mxu0 %v3531_v15  ;;  %1556 = vmatprep.subr.mxu1 %v3532_v12  ;;  %v3541_v15 = vld [vmem:[#allocation34_spill] sm:$0xff] }
 0x56c   :  { %1486 = vmatpush1.msra.mxu0 %v3533_v53  ;;  %1557 = vmatpush1.msra.mxu1 %v3534_v22 }
 0x56d   :  { %1487 = vmatprep.subr.mxu0 %v3535_v45  ;;  %1558 = vmatprep.subr.mxu1 %v3536_v25 }
 0x56e   :  { %1488 = vmatpush1.msra.mxu0 %v3537_v43  ;;  %1521 = vmatprep.mubr.f32.mxu0 %v3538_v44 }
 0x56f   :  { %1559 = vmatpush1.msra.mxu1 %v3539_v16  ;;  %1592 = vmatprep.mubr.f32.mxu1 %v3538_v44  ;;  %v1251_v16 = vld [vmem:[#allocation2 + $0x14] sm:$0xf] }
 0x570   :  { %1662 = vmatprep.subr.mxu0 %v3540_v13  ;;  %1733 = vmatprep.subr.mxu1 %v3541_v15 }
 0x60f   :  { %v1318_v12 = vpop.f32.mrf.mxu0  ;;  %v1389_v53 = vpop.f32.mrf.mxu1 }
 0x611   :  { %v1320_v14 = vpop.f32.mrf.mxu0  ;;  %v1391_v22 = vpop.f32.mrf.mxu1 }
 0x612   :  { %v1398_v17 = vcombine.low %v1318_v12, %v1320_v14  ;;  %v1399_v45 = vcombine.low %v1389_v53, %v1391_v22 }
 0x614   :  { %v1406_v25 = vrot.slane %v1398_v17, %v2680_v52  ;;  %v1413_v43 = vrot.slane %v1399_v45, %v2680_v52 }
 0x616   :  { %v1414_v60 = vcombine.low %v1406_v25, %v1413_v43 }
 0x618   :  { %v1421_v57 = vrot.slane %v1414_v60, %v2680_v52 }
 0x61a   :  { %v1423_v48 = vadd.f32 %v1421_v57, %v1251_v16 }
 0x61c   :  { %v1984_v44 = vmul.f32 -1.442695, %v1423_v48  ;;  %v1431_v50 = vrot.slane %v1423_v48, 1  ;;  %v1442_v15 = vrot.slane %v1423_v48, 3  ;;  %v1439_v55 = vrot.slane %v1423_v48, 2 }
 0x61e   :  { %2138 = vpow2.f32 %v1984_v44  ;;  %v1985_v13 = vmul.f32 -1.442695, %v1431_v50  ;;  %v1986_v46 = vmul.f32 -1.442695, %v1442_v15 }
 0x620   :  { %2140 = vpow2.f32 %v1985_v13 }
 0x621   :  { %2142 = vpow2.f32 %v1986_v46 }
 0x62b   :  { %v2139_v42 = vpop.eup %2138 }
 0x62c   :  { %v1427_v14 = vadd.f32 1.0, %v2139_v42 }
 0x62d   :  { %v2141_v12 = vpop.eup %2140 }
 0x62e   :  { %2144 = vrcp.f32 %v1427_v14  ;;  %v1436_v17 = vadd.f32 1.0, %v2141_v12  ;;  %v2143_v53 = vpop.eup %2142 }
 0x62f   :  { %2146 = vtanh.f32 %v1439_v55  ;;  %v1447_v16 = vadd.f32 1.0, %v2143_v53 }
 0x630   :  { %2148 = vrcp.f32 %v1436_v17 }
 0x631   :  { %2150 = vrcp.f32 %v1447_v16  ;;  %v1877_v16 = vld [vmem:[#allocation6 + $0x60] sm:$0xff] }
 0x63b   :  { %v2145_v60 = vpop.eup %2144 }
 0x63c   :  { %v2147_v22 = vpop.eup %2146 }
 0x63d   :  { %v2149_v57 = vpop.eup %2148  ;;  %v1451_v50 = vmul.f32 %v2147_v22, %v2145_v60  ;;  %v1880_v60 = vld [vmem:[#allocation6 + $0x78] sm:$0xff]  ;;  %v1879_v22 = vld [vmem:[#allocation6 + $0x70] sm:$0xff] }
 0x63e   :  { %v1450_v45 = vmul.f32 %v2149_v57, %v3137_v24  ;;  %v2151_v42 = vpop.eup %2150  ;;  %v1878_v57 = vld [vmem:[#allocation6 + $0x68] sm:$0xff] }
 0x640   :  { %v3210_v25 = vadd.f32 %v1451_v50, %v1450_v45  ;;  %v1876_v45 = vld [vmem:[#allocation6 + $0x58] sm:$0xff]  ;;  %v1875_v50 = vld [vmem:[#allocation6 + $0x50] sm:$0xff] }
 0x642   :  { %2152 = vtanh.f32 %v3210_v25 }
 0x64f   :  { %v2153_v48 = vpop.eup %2152 }
 0x650   :  { %v1454_v46 = vmul.f32 %v2153_v48, %v2151_v42  ;;  %v1873_v42 = vld [vmem:[#allocation6 + $0x40] sm:$0xff]  ;;  %v1872_v48 = vld [vmem:[#allocation6 + $0x38] sm:$0xff] }
 0x652   :  { %1522 = vmatmul.mubr.f32.vlgmr.msra.gmra.mxu0 %v1454_v46  ;;  %1593 = vmatmul.mubr.f32.vlgmr.msra.gmra.mxu1 %v1454_v46  ;;  %v1871_v46 = vld [vmem:[#allocation6 + $0x30] sm:$0xff] }
 0x653   :  { %1663 = vmatpush1.msra.mxu0 %v2866_v61  ;;  %1734 = vmatpush1.msra.mxu1 %v2869_v10  ;;  %v3542_v61 = vld [vmem:[#allocation35_spill] sm:$0xff]  ;;  %v3543_v10 = vld [vmem:[#allocation36_spill] sm:$0xff] }
 0x654   :  { %1664 = vmatprep.subr.mxu0 %v2872_v1  ;;  %1735 = vmatprep.subr.mxu1 %v2875_v11  ;;  %v3544_v1 = vld [vmem:[#allocation14_spill] sm:$0xff]  ;;  %v3545_v11 = vld [vmem:[#allocation15_spill] sm:$0xff] }
 0x655   :  { %1665 = vmatpush1.msra.mxu0 %v2878_v49  ;;  %1736 = vmatpush1.msra.mxu1 %v2881_v59  ;;  %v3546_v49 = vld [vmem:[#allocation16_spill] sm:$0xff]  ;;  %v3547_v59 = vld [vmem:[#allocation17_spill] sm:$0xff] }
 0x656   :  { %1666 = vmatprep.subr.mxu0 %v2884_v3  ;;  %1737 = vmatprep.subr.mxu1 %v2887_v58  ;;  %v3548_v3 = vld [vmem:[#allocation18_spill] sm:$0xff]  ;;  %v3549_v58 = vld [vmem:[#allocation19_spill] sm:$0xff] }
 0x657   :  { %1667 = vmatpush1.msra.mxu0 %v2890_v62  ;;  %1738 = vmatpush1.msra.mxu1 %v2893_v4  ;;  %v3550_v62 = vld [vmem:[#allocation20_spill] sm:$0xff]  ;;  %v3551_v4 = vld [vmem:[#allocation21_spill] sm:$0xff] }
 0x658   :  { %1668 = vmatprep.subr.mxu0 %v2896_v5  ;;  %1739 = vmatprep.subr.mxu1 %v2899_v6  ;;  %v3552_v5 = vld [vmem:[#allocation22_spill] sm:$0xff]  ;;  %v3553_v6 = vld [vmem:[#allocation23_spill] sm:$0xff] }
 0x659   :  { %1669 = vmatpush1.msra.mxu0 %v2902_v7  ;;  %1740 = vmatpush1.msra.mxu1 %v2905_v8  ;;  %v3554_v7 = vld [vmem:[#allocation24_spill] sm:$0xff]  ;;  %v3555_v8 = vld [vmem:[#allocation25_spill] sm:$0xff] }
 0x65a   :  { %1670 = vmatprep.subr.mxu0 %v2985_v56  ;;  %1741 = vmatprep.subr.mxu1 %v2988_v2  ;;  %v3556_v56 = vld [vmem:[#allocation26_spill] sm:$0xff]  ;;  %v3557_v2 = vld [vmem:[#allocation27_spill] sm:$0xff] }
 0x65b   :  { %1671 = vmatpush1.msra.mxu0 %v2991_v63  ;;  %1742 = vmatpush1.msra.mxu1 %v2994_v51  ;;  %v3558_v63 = vld [vmem:[#allocation12_spill] sm:$0xff]  ;;  %v3559_v51 = vld [vmem:[#allocation13_spill] sm:$0xff] }
 0x65c   :  { %1672 = vmatprep.subr.mxu0 %v2997_v9  ;;  %1743 = vmatprep.subr.mxu1 %v3000_v47  ;;  %v3560_v9 = vmov 0.0   ;;  %v3561_v47 = vld [vmem:[#allocation28_spill] sm:$0xff] }
 0x65d   :  { %1673 = vmatpush1.msra.mxu0 %v3003_v0  ;;  %1744 = vmatpush1.msra.mxu1 %v3006_v54 }
 0x65e   :  { %1674 = vmatprep.subr.mxu0 %v3009_v18  ;;  %1745 = vmatprep.subr.mxu1 %v3012_v19 }
 0x65f   :  { %1675 = vmatpush1.msra.mxu0 %v3015_v20  ;;  %1746 = vmatpush1.msra.mxu1 %v3018_v21 }
 0x660   :  { %1676 = vmatprep.subr.mxu0 %v3021_v23  ;;  %1747 = vmatprep.subr.mxu1 %v3024_v26 }
 0x661   :  { %1677 = vmatpush1.msra.mxu0 %v3027_v27  ;;  %1748 = vmatpush1.msra.mxu1 %v3030_v28 }
 0x662   :  { %1678 = vmatprep.subr.mxu0 %v3033_v29  ;;  %1749 = vmatprep.subr.mxu1 %v3036_v30  ;;  %v1456_v29 = vld [vmem:[#allocation2 + $0x18] sm:$0xf] }
 0x663   :  { %1679 = vmatpush1.msra.mxu0 %v3039_v31  ;;  %1750 = vmatpush1.msra.mxu1 %v3042_v32 }
 0x664   :  { %1680 = vmatprep.subr.mxu0 %v3045_v33  ;;  %1751 = vmatprep.subr.mxu1 %v3048_v34 }
 0x665   :  { %1681 = vmatpush1.msra.mxu0 %v3051_v35  ;;  %1752 = vmatpush1.msra.mxu1 %v3054_v36 }
 0x666   :  { %1682 = vmatprep.subr.mxu0 %v3057_v37  ;;  %1753 = vmatprep.subr.mxu1 %v3060_v38 }
 0x667   :  { %1683 = vmatpush1.msra.mxu0 %v3063_v39  ;;  %1754 = vmatpush1.msra.mxu1 %v3066_v40 }
 0x668   :  { %1684 = vmatprep.subr.mxu0 %v3069_v41  ;;  %1755 = vmatprep.subr.mxu1 %v3542_v61  ;;  %v1870_v61 = vld [vmem:[#allocation6 + $0x28] sm:$0xff] }
 0x669   :  { %1685 = vmatpush1.msra.mxu0 %v3543_v10  ;;  %1756 = vmatpush1.msra.mxu1 %v3544_v1  ;;  %v1869_v10 = vld [vmem:[#allocation6 + $0x20] sm:$0xff]  ;;  %v1868_v1 = vld [vmem:[#allocation6 + $0x18] sm:$0xff] }
 0x66a   :  { %1686 = vmatprep.subr.mxu0 %v3545_v11  ;;  %1757 = vmatprep.subr.mxu1 %v3546_v49  ;;  %v1867_v11 = vld [vmem:[#allocation6 + $0x10] sm:$0xff]  ;;  %v1866_v49 = vld [vmem:[#allocation6 + $0x8] sm:$0xff] }
 0x66b   :  { %1687 = vmatpush1.msra.mxu0 %v3547_v59  ;;  %1758 = vmatpush1.msra.mxu1 %v3548_v3  ;;  %v1865_v59 = vld [vmem:[#allocation6] sm:$0xff] }
 0x66c   :  { %1688 = vmatprep.subr.mxu0 %v3549_v58  ;;  %1759 = vmatprep.subr.mxu1 %v3550_v62 }
 0x66d   :  { %1689 = vmatpush1.msra.mxu0 %v3551_v4  ;;  %1760 = vmatpush1.msra.mxu1 %v3552_v5 }
 0x66e   :  { %1690 = vmatprep.subr.mxu0 %v3553_v6  ;;  %1761 = vmatprep.subr.mxu1 %v3554_v7 }
 0x66f   :  { %1691 = vmatpush1.msra.mxu0 %v3555_v8  ;;  %1762 = vmatpush1.msra.mxu1 %v3556_v56 }
 0x670   :  { %1692 = vmatprep.subr.mxu0 %v3557_v2  ;;  %1763 = vmatprep.subr.mxu1 %v3558_v63  ;;  %v1661_v63 = vld [vmem:[#allocation2 + $0x1c] sm:$0xf] }
 0x671   :  { %1693 = vmatpush1.msra.mxu0 %v3559_v51  ;;  %1726 = vmatprep.mubr.f32.mxu0 %v3560_v9 }
 0x672   :  { %1764 = vmatpush1.msra.mxu1 %v3561_v47  ;;  %1797 = vmatprep.mubr.f32.mxu1 %v3560_v9 }
 0x673   :  { %2010 = vmatprep.subr.mxu0 %v3560_v9 }
 0x712   :  { %v1523_v0 = vpop.f32.mrf.mxu0  ;;  %v1594_v54 = vpop.f32.mrf.mxu1 }
 0x714   :  { %v1525_v18 = vpop.f32.mrf.mxu0  ;;  %v1596_v19 = vpop.f32.mrf.mxu1 }
 0x715   :  { %v1603_v20 = vcombine.low %v1523_v0, %v1525_v18  ;;  %v1604_v21 = vcombine.low %v1594_v54, %v1596_v19 }
 0x717   :  { %v1611_v23 = vrot.slane %v1603_v20, %v2680_v52  ;;  %v1618_v26 = vrot.slane %v1604_v21, %v2680_v52 }
 0x719   :  { %v1619_v27 = vcombine.low %v1611_v23, %v1618_v26 }
 0x71b   :  { %v1626_v28 = vrot.slane %v1619_v27, %v2680_v52 }
 0x71d   :  { %v1628_v30 = vadd.f32 %v1626_v28, %v1456_v29 }
 0x71f   :  { %v1987_v31 = vmul.f32 -1.442695, %v1628_v30  ;;  %v1636_v32 = vrot.slane %v1628_v30, 1  ;;  %v1647_v34 = vrot.slane %v1628_v30, 3  ;;  %v1644_v37 = vrot.slane %v1628_v30, 2 }
 0x721   :  { %2154 = vpow2.f32 %v1987_v31  ;;  %v1988_v33 = vmul.f32 -1.442695, %v1636_v32  ;;  %v1989_v35 = vmul.f32 -1.442695, %v1647_v34 }
 0x723   :  { %2156 = vpow2.f32 %v1988_v33 }
 0x724   :  { %2158 = vpow2.f32 %v1989_v35 }
 0x72e   :  { %v2155_v36 = vpop.eup %2154 }
 0x72f   :  { %v1632_v38 = vadd.f32 1.0, %v2155_v36 }
 0x730   :  { %v2157_v39 = vpop.eup %2156 }
 0x731   :  { %2160 = vrcp.f32 %v1632_v38  ;;  %v1641_v40 = vadd.f32 1.0, %v2157_v39  ;;  %v2159_v41 = vpop.eup %2158 }
 0x732   :  { %2162 = vtanh.f32 %v1644_v37  ;;  %v1652_v44 = vadd.f32 1.0, %v2159_v41  ;;  %v1881_v37 = vld [vmem:[%s3316_s5] sm:$0x1] }
 0x733   :  { %2164 = vrcp.f32 %v1641_v40 }
 0x734   :  { %2166 = vrcp.f32 %v1652_v44 }
 0x73e   :  { %v2161_v24 = vpop.eup %2160 }
 0x73f   :  { %v2163_v55 = vpop.eup %2162 }
 0x740   :  { %v2165_v43 = vpop.eup %2164  ;;  %v1656_v15 = vmul.f32 %v2163_v55, %v2161_v24 }
 0x741   :  { %v1655_v13 = vmul.f32 %v2165_v43, %v3210_v25  ;;  %v2167_v12 = vpop.eup %2166  ;;  %v1874_v25 = vld [vmem:[#allocation6 + $0x48] sm:$0xff] }
 0x743   :  { %v3282_v14 = vadd.f32 %v1656_v15, %v1655_v13 }
 0x745   :  { %2168 = vtanh.f32 %v3282_v14 }
 0x752   :  { %v2169_v17 = vpop.eup %2168 }
 0x753   :  { %v1659_v53 = vmul.f32 %v2169_v17, %v2167_v12 }
 0x755   :  { %1727 = vmatmul.mubr.f32.vlgmr.msra.gmra.mxu0 %v1659_v53  ;;  %1798 = vmatmul.mubr.f32.vlgmr.msra.gmra.mxu1 %v1659_v53 }
 0x756   :  { %2011 = vmatpush3.msra.mxu0 %v1880_v60  ;;  %2042 = vmatprep.mubr.msk.f32.mxu0 %vm2325_vm1, %v3560_v9 }
 0x757   :  { %2012 = vmatprep.subr.mxu0 %v3560_v9 }
 0x758   :  { %2013 = vmatpush3.msra.mxu0 %v1879_v22 }
 0x759   :  { %2014 = vmatprep.subr.mxu0 %v3560_v9 }
 0x75a   :  { %2015 = vmatpush3.msra.mxu0 %v1878_v57 }
 0x75b   :  { %2016 = vmatprep.subr.mxu0 %v3560_v9 }
 0x75c   :  { %2017 = vmatpush3.msra.mxu0 %v1877_v16 }
 0x75d   :  { %2018 = vmatprep.subr.mxu0 %v3560_v9 }
 0x75e   :  { %2019 = vmatpush3.msra.mxu0 %v1876_v45 }
 0x75f   :  { %2020 = vmatprep.subr.mxu0 %v3560_v9 }
 0x760   :  { %2021 = vmatpush3.msra.mxu0 %v1875_v50 }
 0x761   :  { %2022 = vmatprep.subr.mxu0 %v3560_v9 }
 0x762   :  { %2023 = vmatpush3.msra.mxu0 %v1874_v25 }
 0x763   :  { %2024 = vmatprep.subr.mxu0 %v3560_v9 }
 0x764   :  { %2025 = vmatpush3.msra.mxu0 %v1873_v42 }
 0x765   :  { %2026 = vmatprep.subr.mxu0 %v3560_v9 }
 0x766   :  { %2027 = vmatpush3.msra.mxu0 %v1872_v48 }
 0x767   :  { %2028 = vmatprep.subr.mxu0 %v3560_v9 }
 0x768   :  { %2029 = vmatpush3.msra.mxu0 %v1871_v46 }
 0x769   :  { %2030 = vmatprep.subr.mxu0 %v3560_v9 }
 0x76a   :  { %2031 = vmatpush3.msra.mxu0 %v1870_v61 }
 0x76b   :  { %2032 = vmatprep.subr.mxu0 %v3560_v9 }
 0x76c   :  { %2033 = vmatpush3.msra.mxu0 %v1869_v10 }
 0x76d   :  { %2034 = vmatprep.subr.mxu0 %v3560_v9 }
 0x76e   :  { %2035 = vmatpush3.msra.mxu0 %v1868_v1 }
 0x76f   :  { %2036 = vmatprep.subr.mxu0 %v3560_v9 }
 0x770   :  { %2037 = vmatpush3.msra.mxu0 %v1867_v11 }
 0x771   :  { %2038 = vmatprep.subr.mxu0 %v3560_v9 }
 0x772   :  { %2039 = vmatpush3.msra.mxu0 %v1866_v49 }
 0x773   :  { %2040 = vmatprep.subr.mxu0 %v3560_v9 }
 0x774   :  { %2041 = vmatpush3.msra.mxu0 %v1865_v59 }
 0x815   :  { %v1728_v3 = vpop.f32.mrf.mxu0  ;;  %v1799_v58 = vpop.f32.mrf.mxu1 }
 0x817   :  { %v1730_v62 = vpop.f32.mrf.mxu0  ;;  %v1801_v4 = vpop.f32.mrf.mxu1 }
 0x818   :  { %v1808_v5 = vcombine.low %v1728_v3, %v1730_v62  ;;  %v1809_v6 = vcombine.low %v1799_v58, %v1801_v4 }
 0x81a   :  { %v1816_v7 = vrot.slane %v1808_v5, %v2680_v52  ;;  %v1823_v8 = vrot.slane %v1809_v6, %v2680_v52 }
 0x81c   :  { %v1824_v56 = vcombine.low %v1816_v7, %v1823_v8 }
 0x81e   :  { %v1831_v2 = vrot.slane %v1824_v56, %v2680_v52 }
 0x820   :  { %v1833_v51 = vadd.f32 %v1831_v2, %v1661_v63 }
 0x822   :  { %v1990_v47 = vmul.f32 -1.442695, %v1833_v51  ;;  %v1841_v0 = vrot.slane %v1833_v51, 1  ;;  %v1852_v54 = vrot.slane %v1833_v51, 3  ;;  %v1849_v20 = vrot.slane %v1833_v51, 2 }
 0x824   :  { %2170 = vpow2.f32 %v1990_v47  ;;  %v1991_v9 = vmul.f32 -1.442695, %v1841_v0  ;;  %v1992_v18 = vmul.f32 -1.442695, %v1852_v54 }
 0x826   :  { %2172 = vpow2.f32 %v1991_v9 }
 0x827   :  { %2174 = vpow2.f32 %v1992_v18 }
 0x831   :  { %v2171_v19 = vpop.eup %2170 }
 0x832   :  { %v1837_v21 = vadd.f32 1.0, %v2171_v19 }
 0x833   :  { %v2173_v23 = vpop.eup %2172 }
 0x834   :  { %2176 = vrcp.f32 %v1837_v21  ;;  %v1846_v26 = vadd.f32 1.0, %v2173_v23  ;;  %v2175_v27 = vpop.eup %2174 }
 0x835   :  { %2178 = vtanh.f32 %v1849_v20  ;;  %v1857_v30 = vadd.f32 1.0, %v2175_v27 }
 0x836   :  { %2180 = vrcp.f32 %v1846_v26 }
 0x837   :  { %2182 = vrcp.f32 %v1857_v30 }
 0x841   :  { %v2177_v52 = vpop.eup %2176 }
 0x842   :  { %v2179_v28 = vpop.eup %2178 }
 0x843   :  { %v2181_v29 = vpop.eup %2180  ;;  %v1861_v32 = vmul.f32 %v2179_v28, %v2177_v52 }
 0x844   :  { %v1860_v31 = vmul.f32 %v2181_v29, %v3282_v14  ;;  %v2183_v34 = vpop.eup %2182 }
 0x846   :  { %v1862_v33 = vadd.f32 %v1861_v32, %v1860_v31 }
 0x848   :  { %2184 = vtanh.f32 %v1862_v33 }
 0x855   :  { %v2185_v35 = vpop.eup %2184 }
 0x856   :  { %v1864_v36 = vmul.f32 %v2185_v35, %v2183_v34 }
 0x858   :  { %2043 = vmatmul.mubr.f32.vlgmr.msra.gmra.mxu0 %v1864_v36 }
 0x918   :  { %v1948_v38 = vpop.f32.mrf.mxu0 }
 0x919   :  { %v1949_v39 = vadd.f32 %v1948_v38, %v1881_v37 }
 0x91a   :  { %v2044_v40 = vpop.f32.mrf.mxu0 }
 0x91b   :  { %1952 = vst [vmem:[#allocation8] sm:$0x1] %v1949_v39 }
 0x91c   :  { %2301 = shalt.err (!%p2298_p0)
}
 0x91d   :  { %1962 = dma.vmem_to_hbm [thread:$0]  %s1960_s29, 16, %s3317_s6, [#allocation5]  }
 0x91e   :  { %2314 = dma.done.wait [#allocation5], 16  }
 0x91f   :  { %2315 = vsyncadd [#allocation5], 4294967280 }
 0x920   :  { %1966 = vsyncpa [#allocation4], 1 }
 0x921   :  { %1967 = vsyncpa [#allocation7], 1 }
 0x922   :  { %1968 = vsyncpa [#allocation5], 1 }

</bundles_post_ra>
